<compile_context>
chip_gen: v6e
topology: v6e:2x2x1
jax: 0.10.0
libtpu: 0.0.40
codegen_flags: <defaults>
</compile_context>

<pallas_src>
import math

import jax
import jax.numpy as jnp
import numpy as np
from jax.experimental import pallas as pl
from jax.experimental.pallas import tpu as pltpu

# ---- model hyper-parameters (small, consistent with the module) -------------
B = 2                  # batch
L = 16                 # sequence length (padded)
DIM = 64               # model dim
NUM_HEADS = 4
HEAD_DIM = DIM // NUM_HEADS    # 16
HALF = HEAD_DIM // 2           # complex (RoPE) pairs per head = 8
HDIM2 = DIM // 2               # 32
EPS = 1e-6
SCALE = 1.0 / math.sqrt(HEAD_DIM)
NEG_INF = -1e30


# ---------------------------- Pallas kernel ----------------------------------
def wan_self_attn_kernel(seq_lens_ref,      # SMEM [B] int32 (scalar prefetch)
                         x_ref,             # [L, DIM] f32     (per-batch block)
                         rope_ref,          # [L, DIM] f32     [cos x NUM_HEADS | sin x NUM_HEADS]
                         g_ref,             # [1, 2*DIM] f32   [gq_perm | gk_perm]
                         wqkv_ref,          # [DIM, 3*DIM] bf16  [Wq_perm | Wk_perm | Wv]
                         bqkv_ref,          # [1, 3*DIM] f32
                         wo_ref,            # [DIM, DIM] bf16  (input-major)
                         bo_ref,            # [1, DIM] f32
                         o_ref,             # [L, DIM] f32     (per-batch block)
                         attn_ref):         # VMEM scratch [L, DIM] f32
    b = pl.program_id(0)

    # Fused q|k|v projection: one lane-dense bf16 MXU matmul, f32 accumulate.
    x16 = x_ref[...].astype(jnp.bfloat16)
    qkv = jnp.dot(x16, wqkv_ref[...], preferred_element_type=jnp.float32) + bqkv_ref[...]
    q = qkv[:, :DIM]
    k = qkv[:, DIM:2 * DIM]
    v16 = qkv[:, 2 * DIM:].astype(jnp.bfloat16)

    # WanRMSNorm inverse scales (channel-permutation invariant); the attention
    # 1/sqrt(head_dim) scale is folded into inv_q (review: drop `s * SCALE`).
    inv_q = jax.lax.rsqrt(jnp.mean(q * q, axis=-1, keepdims=True) + EPS) * SCALE
    inv_k = jax.lax.rsqrt(jnp.mean(k * k, axis=-1, keepdims=True) + EPS)

    # RMSNorm per-channel weight, applied before the (linear) RoPE rotation.
    g = g_ref[...]
    qg = q * g[:, :DIM]
    kg = k * g[:, DIM:]

    # RoPE: q/k channels are laid out [re(DIM/2) | im(DIM/2)] (head-major inside
    # each half), so the complex rotation is pure element-wise math on two
    # half-slabs -- no lane shuffle, no extra "swapped" projection columns.
    cosv = rope_ref[:, :HDIM2]
    sinv = rope_ref[:, HDIM2:]
    q_re, q_im = qg[:, :HDIM2], qg[:, HDIM2:]
    k_re, k_im = kg[:, :HDIM2], kg[:, HDIM2:]
    qr_re = ((q_re * cosv - q_im * sinv) * inv_q).astype(jnp.bfloat16)
    qr_im = ((q_re * sinv + q_im * cosv) * inv_q).astype(jnp.bfloat16)
    kr_re = ((k_re * cosv - k_im * sinv) * inv_k).astype(jnp.bfloat16)
    kr_im = ((k_re * sinv + k_im * cosv) * inv_k).astype(jnp.bfloat16)

    # Per-batch key mask as a [1, L] additive bias, hoisted out of the head loop.
    col = jax.lax.broadcasted_iota(jnp.int32, (1, L), 1)
    mask_bias = jnp.where(col < seq_lens_ref[b], 0.0, NEG_INF).astype(jnp.float32)

    dn = (((1,), (1,)), ((), ()))                     # contract last dims (q @ k^T)
    for h in range(NUM_HEADS):                        # static unroll (NUM_HEADS = 4)
        cs = slice(h * HALF, (h + 1) * HALF)
        # Head-h score: re/im halves contracted separately and summed -- identical
        # to the 16-wide per-head contraction, just split across the two slabs.
        s = (jax.lax.dot_general(qr_re[:, cs], kr_re[:, cs], dn,
                                 preferred_element_type=jnp.float32)
             + jax.lax.dot_general(qr_im[:, cs], kr_im[:, cs], dn,
                                   preferred_element_type=jnp.float32))
        s = s + mask_bias

        m = jnp.max(s, axis=-1, keepdims=True)
        p = jnp.exp(s - m)
        denom = jnp.sum(p, axis=-1, keepdims=True)
        pv = jnp.dot(p.astype(jnp.bfloat16), v16[:, h * HEAD_DIM:(h + 1) * HEAD_DIM],
                     preferred_element_type=jnp.float32)
        # Deferred softmax normalization on the narrow [L, HEAD_DIM] tile.
        attn_ref[:, h * HEAD_DIM:(h + 1) * HEAD_DIM] = pv * pl.reciprocal(denom, approx=True)

    # ONE fused output projection after the head loop (K = DIM, not 4 x K = HEAD_DIM).
    o_ref[...] = jnp.dot(attn_ref[...].astype(jnp.bfloat16), wo_ref[...],
                         preferred_element_type=jnp.float32) + bo_ref[...]


# ------------------------------ wrapper ---------------------------------------
def wan_self_attention(x, seq_lens, rope_tab, g_qk, w_qkv, b_qkv, wo_t, bo):
    x2d = x.reshape(B * L, DIM)
    batch_map = lambda b, sl: (b, 0)      # per-batch activation / output blocks
    resident = lambda b, sl: (0, 0)       # weights stay VMEM-resident across steps

    grid_spec = pltpu.PrefetchScalarGridSpec(
        num_scalar_prefetch=1,
        grid=(B,),
        in_specs=[
            pl.BlockSpec((L, DIM), batch_map),          # x       [B*L, DIM]
            pl.BlockSpec((L, DIM), batch_map),          # rope    [B*L, DIM]
            pl.BlockSpec((1, 2 * DIM), resident),       # g_qk    [1, 2*DIM]
            pl.BlockSpec((DIM, 3 * DIM), resident),     # w_qkv   [DIM, 3*DIM] bf16
            pl.BlockSpec((1, 3 * DIM), resident),       # b_qkv   [1, 3*DIM]
            pl.BlockSpec((DIM, DIM), resident),         # wo_t    [DIM, DIM]   bf16
            pl.BlockSpec((1, DIM), resident),           # bo      [1, DIM]
        ],
        out_specs=pl.BlockSpec((L, DIM), batch_map),
        scratch_shapes=[pltpu.VMEM((L, DIM), jnp.float32)],
    )
    out2d = pl.pallas_call(
        wan_self_attn_kernel,
        out_shape=jax.ShapeDtypeStruct((B * L, DIM), jnp.float32),
        grid_spec=grid_spec,
        compiler_params=pltpu.CompilerParams(dimension_semantics=("parallel",)),
    )(seq_lens, x2d, rope_tab, g_qk, w_qkv, b_qkv, wo_t, bo.reshape(1, DIM))
    return out2d.reshape(B, L, DIM)


# ------------------------ host-side glue (RoPE tables) -------------------------
def rope_freq_table(max_len, head_dim, theta=10000.0):
    """Mirrors Wan's concatenated (t, h, w) rope_params: cos/sin of [max_len, head_dim//2]."""
    sizes = [head_dim - 4 * (head_dim // 6), 2 * (head_dim // 6), 2 * (head_dim // 6)]
    pos = np.arange(max_len, dtype=np.float64)
    cos_parts, sin_parts = [], []
    for dsub in sizes:
        inv = 1.0 / theta ** (np.arange(0, dsub, 2, dtype=np.float64) / dsub)
        ang = np.outer(pos, inv)
        cos_parts.append(np.cos(ang))
        sin_parts.append(np.sin(ang))
    cos = np.concatenate(cos_parts, axis=1).astype(np.float32)
    sin = np.concatenate(sin_parts, axis=1).astype(np.float32)
    assert cos.shape == (max_len, head_dim // 2)
    return cos, sin


def build_rope_tables(grid_sizes, seq_len_pad, cos_tab, sin_tab, c):
    """Per-batch [L, c] cos/sin position tables; identity rotation past f*h*w."""
    c0 = c - 2 * (c // 3)
    c1 = c // 3
    cos_all, sin_all = [], []
    for (f, h, w) in grid_sizes:
        seq = f * h * w

        def combine(tab):
            tf = np.broadcast_to(tab[:f, :c0].reshape(f, 1, 1, c0), (f, h, w, c0))
            th = np.broadcast_to(tab[:h, c0:c0 + c1].reshape(1, h, 1, c1), (f, h, w, c1))
            tw = np.broadcast_to(tab[:w, c0 + c1:].reshape(1, 1, w, c1), (f, h, w, c1))
            return np.concatenate([tf, th, tw], axis=-1).reshape(seq, c)

        ci, si = combine(cos_tab), combine(sin_tab)
        pad = seq_len_pad - seq
        ci = np.concatenate([ci, np.ones((pad, c), np.float32)], axis=0)
        si = np.concatenate([si, np.zeros((pad, c), np.float32)], axis=0)
        cos_all.append(ci)
        sin_all.append(si)
    return (np.stack(cos_all).astype(np.float32),
            np.stack(sin_all).astype(np.float32))


def prepare_kernel_params(Wq, bq, Wk, bk, Wv, bv, Wo, gq, gk, cos_b, sin_b):
    """Fuse weights / biases / norm weights / RoPE tables into the kernel layout."""
    Wq, bq, Wk, bk, Wv, bv, Wo, gq, gk = map(np.asarray, (Wq, bq, Wk, bk, Wv, bv, Wo, gq, gk))

    # Grouped layout for q/k output channels: [all re | all im], head-major in each half.
    re_idx = np.concatenate([h * HEAD_DIM + 2 * np.arange(HALF) for h in range(NUM_HEADS)])
    perm = np.concatenate([re_idx, re_idx + 1])                                 # [DIM]

    WqT, WkT, WvT, WoT = Wq.T, Wk.T, Wv.T, Wo.T                                 # [in, out]
    w_qkv = np.concatenate([WqT[:, perm], WkT[:, perm], WvT], axis=1)           # [DIM, 3*DIM]
    b_qkv = np.concatenate([bq[perm], bk[perm], bv])[None, :]                   # [1, 3*DIM]
    g_qk = np.concatenate([gq[perm], gk[perm]])[None, :]                        # [1, 2*DIM]

    # RoPE table [B*L, DIM]: cos / sin tiled across heads (same freqs per head).
    cos_g = np.tile(cos_b, (1, 1, NUM_HEADS))                                   # [B, L, DIM/2]
    sin_g = np.tile(sin_b, (1, 1, NUM_HEADS))
    rope_tab = np.concatenate([cos_g, sin_g], axis=-1).reshape(B * L, DIM)

    return (jnp.asarray(w_qkv, jnp.bfloat16), jnp.asarray(b_qkv, jnp.float32),
            jnp.asarray(g_qk, jnp.float32), jnp.asarray(WoT, jnp.bfloat16),
            jnp.asarray(rope_tab, jnp.float32))


# ------------------------------ pure-JAX reference -----------------------------
def reference_forward(x, seq_lens, cos_b, sin_b, Wq, bq, Wk, bk, Wv, bv, Wo, bo, gq, gk):
    hp = jax.lax.Precision.HIGHEST
    q = jnp.einsum('blc,oc->blo', x, Wq, precision=hp) + bq
    k = jnp.einsum('blc,oc->blo', x, Wk, precision=hp) + bk
    v = jnp.einsum('blc,oc->blo', x, Wv, precision=hp) + bv

    def rms(t, g):
        ms = jnp.mean(t * t, axis=-1, keepdims=True)
        return t * jax.lax.rsqrt(ms + EPS) * g

    q, k = rms(q, gq), rms(k, gk)
    q = q.reshape(B, L, NUM_HEADS, HEAD_DIM)
    k = k.reshape(B, L, NUM_HEADS, HEAD_DIM)
    v = v.reshape(B, L, NUM_HEADS, HEAD_DIM)

    cos = cos_b[:, :, None, :]
    sin = sin_b[:, :, None, :]

    def rope(t):
        tr, ti = t[..., 0::2], t[..., 1::2]
        rr = tr * cos - ti * sin
        ri = tr * sin + ti * cos
        return jnp.stack([rr, ri], axis=-1).reshape(B, L, NUM_HEADS, HEAD_DIM)

    q, k = rope(q), rope(k)
    s = jnp.einsum('blnd,bmnd->bnlm', q, k, precision=hp) * SCALE
    mask = (jnp.arange(L)[None, :] < seq_lens[:, None])[:, None, None, :]
    s = jnp.where(mask, s, NEG_INF)
    p = jax.nn.softmax(s, axis=-1)
    o = jnp.einsum('bnlm,bmnd->blnd', p, v, precision=hp).reshape(B, L, DIM)
    return jnp.einsum('blc,oc->blo', o, Wo, precision=hp) + bo


# ---------------------------------- main ---------------------------------------
if __name__ == "__main__":
    key = jax.random.PRNGKey(0)
    ks = jax.random.split(key, 12)

    def lin(kw, kb):
        W = (jax.random.normal(kw, (DIM, DIM)) * 0.08).astype(jnp.float32)   # [out, in]
        b = (jax.random.normal(kb, (DIM,)) * 0.05).astype(jnp.float32)
        return W, b

    Wq, bq = lin(ks[0], ks[1])
    Wk, bk = lin(ks[2], ks[3])
    Wv, bv = lin(ks[4], ks[5])
    Wo, bo = lin(ks[6], ks[7])
    gq = (1.0 + 0.1 * jax.random.normal(ks[8], (DIM,))).astype(jnp.float32)
    gk = (1.0 + 0.1 * jax.random.normal(ks[9], (DIM,))).astype(jnp.float32)

    x = jax.random.normal(ks[10], (B, L, DIM), dtype=jnp.float32)

    grid_sizes = [(2, 2, 4), (2, 2, 2)]                    # (F, H, W) per batch
    seq_lens = jnp.array([f * h * w for (f, h, w) in grid_sizes], dtype=jnp.int32)

    cos_tab, sin_tab = rope_freq_table(1024, HEAD_DIM)     # freqs [1024, head_dim//2]
    cos_np, sin_np = build_rope_tables(grid_sizes, L, cos_tab, sin_tab, HALF)

    w_qkv, b_qkv, g_qk, wo_t, rope_tab = prepare_kernel_params(
        Wq, bq, Wk, bk, Wv, bv, Wo, gq, gk, cos_np, sin_np)

    out = wan_self_attention(x, seq_lens, rope_tab, g_qk, w_qkv, b_qkv, wo_t, bo)
    out = jax.block_until_ready(out)

    ref = reference_forward(x, seq_lens, jnp.asarray(cos_np), jnp.asarray(sin_np),
                            Wq, bq, Wk, bk, Wv, bv, Wo, bo, gq, gk)
    ref = jax.block_until_ready(ref)

    assert out.shape == (B, L, DIM)
    assert bool(jnp.all(jnp.isfinite(out)))
    # Tolerance accounts for bf16 MXU inputs + approx reciprocal vs f32-HIGHEST reference.
    np.testing.assert_allclose(np.asarray(out), np.asarray(ref), atol=3e-2, rtol=3e-2)
    print("KERNEL_OK")
</pallas_src>

<mosaic_0001>
module attributes {stable_mosaic.version = 11 : i64} {
  func.func @wan_self_attn_kernel(%arg0: i32, %arg1: memref<2xi32, #tpu.memory_space<smem>>, %arg2: memref<16x64xf32, #tpu.memory_space<vmem>>, %arg3: memref<16x64xf32, #tpu.memory_space<vmem>>, %arg4: memref<1x128xf32, #tpu.memory_space<vmem>>, %arg5: memref<64x192xbf16, #tpu.memory_space<vmem>>, %arg6: memref<1x192xf32, #tpu.memory_space<vmem>>, %arg7: memref<64x64xbf16, #tpu.memory_space<vmem>>, %arg8: memref<1x64xf32, #tpu.memory_space<vmem>>, %arg9: memref<16x64xf32, #tpu.memory_space<vmem>>, %arg10: memref<16x64xf32, #tpu.memory_space<vmem>>) attributes {dimension_semantics = [#tpu.dimension_semantics<parallel>], iteration_bounds = array<i64: 2>, scalar_prefetch = 1 : i64, scratch_operands = 1 : i64, tpu.core_type = #tpu.core_type<tc>, window_params = [{transform_indices = @transform_0, window_bounds = array<i64: 16, 64>}, {transform_indices = @transform_1, window_bounds = array<i64: 16, 64>}, {pipeline_mode = #tpu.pipeline_mode<synchronous>, transform_indices = @transform_2, window_bounds = array<i64: 1, 128>}, {pipeline_mode = #tpu.pipeline_mode<synchronous>, transform_indices = @transform_3, window_bounds = array<i64: 64, 192>}, {pipeline_mode = #tpu.pipeline_mode<synchronous>, transform_indices = @transform_4, window_bounds = array<i64: 1, 192>}, {pipeline_mode = #tpu.pipeline_mode<synchronous>, transform_indices = @transform_5, window_bounds = array<i64: 64, 64>}, {pipeline_mode = #tpu.pipeline_mode<synchronous>, transform_indices = @transform_6, window_bounds = array<i64: 1, 64>}, {transform_indices = @transform_7, window_bounds = array<i64: 16, 64>}]} {
    %c0 = arith.constant 0 : index
    %c0_0 = arith.constant 0 : index
    %0 = vector.load %arg2[%c0, %c0_0] : memref<16x64xf32, #tpu.memory_space<vmem>>, vector<16x64xf32>
    %1 = arith.truncf %0 : vector<16x64xf32> to vector<16x64xbf16>
    %c0_1 = arith.constant 0 : index
    %c0_2 = arith.constant 0 : index
    %2 = vector.load %arg5[%c0_1, %c0_2] : memref<64x192xbf16, #tpu.memory_space<vmem>>, vector<64x192xbf16>
    %cst = arith.constant dense<0.000000e+00> : vector<16x192xf32>
    %3 = tpu.matmul %1, %2, %cst {dimension_numbers = #tpu.dot_dimension_numbers<[1], [0], [0], [1], [0, 0, 1, 1], [], []>} : vector<16x64xbf16>, vector<64x192xbf16>, vector<16x192xf32> -> vector<16x192xf32>
    %c0_3 = arith.constant 0 : index
    %c0_4 = arith.constant 0 : index
    %4 = vector.load %arg6[%c0_3, %c0_4] : memref<1x192xf32, #tpu.memory_space<vmem>>, vector<1x192xf32>
    %5 = vector.broadcast %4 : vector<1x192xf32> to vector<16x192xf32>
    %6 = arith.addf %3, %5 : vector<16x192xf32>
    %7 = vector.extract_strided_slice %6 {offsets = [0, 0], sizes = [16, 64], strides = [1, 1]} : vector<16x192xf32> to vector<16x64xf32>
    %8 = vector.extract_strided_slice %6 {offsets = [0, 64], sizes = [16, 64], strides = [1, 1]} : vector<16x192xf32> to vector<16x64xf32>
    %9 = vector.extract_strided_slice %6 {offsets = [0, 128], sizes = [16, 64], strides = [1, 1]} : vector<16x192xf32> to vector<16x64xf32>
    %10 = arith.truncf %9 : vector<16x64xf32> to vector<16x64xbf16>
    %11 = arith.mulf %7, %7 : vector<16x64xf32>
    %cst_5 = arith.constant dense<0.000000e+00> : vector<16xf32>
    %12 = vector.multi_reduction <add>, %11, %cst_5 [1] : vector<16x64xf32> to vector<16xf32>
    %13 = vector.shape_cast %12 : vector<16xf32> to vector<16x1xf32>
    %cst_6 = arith.constant 6.400000e+01 : f32
    %14 = vector.broadcast %cst_6 : f32 to vector<16x1xf32>
    %15 = arith.divf %13, %14 : vector<16x1xf32>
    %cst_7 = arith.constant 9.99999997E-7 : f32
    %16 = vector.broadcast %cst_7 : f32 to vector<16x1xf32>
    %17 = arith.addf %15, %16 : vector<16x1xf32>
    %18 = math.rsqrt %17 : vector<16x1xf32>
    %cst_8 = arith.constant 2.500000e-01 : f32
    %19 = vector.broadcast %cst_8 : f32 to vector<16x1xf32>
    %20 = arith.mulf %18, %19 : vector<16x1xf32>
    %21 = arith.mulf %8, %8 : vector<16x64xf32>
    %cst_9 = arith.constant dense<0.000000e+00> : vector<16xf32>
    %22 = vector.multi_reduction <add>, %21, %cst_9 [1] : vector<16x64xf32> to vector<16xf32>
    %23 = vector.shape_cast %22 : vector<16xf32> to vector<16x1xf32>
    %cst_10 = arith.constant 6.400000e+01 : f32
    %24 = vector.broadcast %cst_10 : f32 to vector<16x1xf32>
    %25 = arith.divf %23, %24 : vector<16x1xf32>
    %cst_11 = arith.constant 9.99999997E-7 : f32
    %26 = vector.broadcast %cst_11 : f32 to vector<16x1xf32>
    %27 = arith.addf %25, %26 : vector<16x1xf32>
    %28 = math.rsqrt %27 : vector<16x1xf32>
    %c0_12 = arith.constant 0 : index
    %c0_13 = arith.constant 0 : index
    %29 = vector.load %arg4[%c0_12, %c0_13] : memref<1x128xf32, #tpu.memory_space<vmem>>, vector<1x128xf32>
    %30 = vector.extract_strided_slice %29 {offsets = [0, 0], sizes = [1, 64], strides = [1, 1]} : vector<1x128xf32> to vector<1x64xf32>
    %31 = vector.broadcast %30 : vector<1x64xf32> to vector<16x64xf32>
    %32 = arith.mulf %7, %31 : vector<16x64xf32>
    %33 = vector.extract_strided_slice %29 {offsets = [0, 64], sizes = [1, 64], strides = [1, 1]} : vector<1x128xf32> to vector<1x64xf32>
    %34 = vector.broadcast %33 : vector<1x64xf32> to vector<16x64xf32>
    %35 = arith.mulf %8, %34 : vector<16x64xf32>
    %c0_14 = arith.constant 0 : index
    %c0_15 = arith.constant 0 : index
    %36 = vector.load %arg3[%c0_14, %c0_15] : memref<16x64xf32, #tpu.memory_space<vmem>>, vector<16x32xf32>
    %c0_16 = arith.constant 0 : index
    %c32 = arith.constant 32 : index
    %37 = vector.load %arg3[%c0_16, %c32] : memref<16x64xf32, #tpu.memory_space<vmem>>, vector<16x32xf32>
    %38 = vector.extract_strided_slice %32 {offsets = [0, 0], sizes = [16, 32], strides = [1, 1]} : vector<16x64xf32> to vector<16x32xf32>
    %39 = vector.extract_strided_slice %32 {offsets = [0, 32], sizes = [16, 32], strides = [1, 1]} : vector<16x64xf32> to vector<16x32xf32>
    %40 = vector.extract_strided_slice %35 {offsets = [0, 0], sizes = [16, 32], strides = [1, 1]} : vector<16x64xf32> to vector<16x32xf32>
    %41 = vector.extract_strided_slice %35 {offsets = [0, 32], sizes = [16, 32], strides = [1, 1]} : vector<16x64xf32> to vector<16x32xf32>
    %42 = arith.mulf %38, %36 : vector<16x32xf32>
    %43 = arith.mulf %39, %37 : vector<16x32xf32>
    %44 = arith.subf %42, %43 : vector<16x32xf32>
    %45 = vector.broadcast %20 : vector<16x1xf32> to vector<16x32xf32>
    %46 = arith.mulf %44, %45 : vector<16x32xf32>
    %47 = arith.truncf %46 : vector<16x32xf32> to vector<16x32xbf16>
    %48 = arith.mulf %38, %37 : vector<16x32xf32>
    %49 = arith.mulf %39, %36 : vector<16x32xf32>
    %50 = arith.addf %48, %49 : vector<16x32xf32>
    %51 = vector.broadcast %20 : vector<16x1xf32> to vector<16x32xf32>
    %52 = arith.mulf %50, %51 : vector<16x32xf32>
    %53 = arith.truncf %52 : vector<16x32xf32> to vector<16x32xbf16>
    %54 = arith.mulf %40, %36 : vector<16x32xf32>
    %55 = arith.mulf %41, %37 : vector<16x32xf32>
    %56 = arith.subf %54, %55 : vector<16x32xf32>
    %57 = vector.broadcast %28 : vector<16x1xf32> to vector<16x32xf32>
    %58 = arith.mulf %56, %57 : vector<16x32xf32>
    %59 = arith.truncf %58 : vector<16x32xf32> to vector<16x32xbf16>
    %60 = arith.mulf %40, %37 : vector<16x32xf32>
    %61 = arith.mulf %41, %36 : vector<16x32xf32>
    %62 = arith.addf %60, %61 : vector<16x32xf32>
    %63 = vector.broadcast %28 : vector<16x1xf32> to vector<16x32xf32>
    %64 = arith.mulf %62, %63 : vector<16x32xf32>
    %65 = arith.truncf %64 : vector<16x32xf32> to vector<16x32xbf16>
    %66 = tpu.iota {dimensions = array<i32: 1>} : vector<1x16xi32>
    %67 = arith.index_cast %arg0 : i32 to index
    %68 = memref.load %arg1[%67] : memref<2xi32, #tpu.memory_space<smem>>
    %69 = vector.broadcast %68 : i32 to vector<1x16xi32>
    %70 = arith.cmpi slt, %66, %69 : vector<1x16xi32>
    %cst_17 = arith.constant 0.000000e+00 : f32
    %cst_18 = arith.constant -1.000000e+30 : f32
    %71 = vector.broadcast %cst_17 : f32 to vector<1x16xf32>
    %72 = vector.broadcast %cst_18 : f32 to vector<1x16xf32>
    %73 = arith.select %70, %71, %72 : vector<1x16xi1>, vector<1x16xf32>
    %74 = vector.extract_strided_slice %47 {offsets = [0, 0], sizes = [16, 8], strides = [1, 1]} : vector<16x32xbf16> to vector<16x8xbf16>
    %75 = vector.extract_strided_slice %59 {offsets = [0, 0], sizes = [16, 8], strides = [1, 1]} : vector<16x32xbf16> to vector<16x8xbf16>
    %cst_19 = arith.constant dense<0.000000e+00> : vector<16x16xf32>
    %76 = tpu.matmul %74, %75, %cst_19 {dimension_numbers = #tpu.dot_dimension_numbers<[1], [1], [0], [0], [0, 0, 1, 0], [], []>} : vector<16x8xbf16>, vector<16x8xbf16>, vector<16x16xf32> -> vector<16x16xf32>
    %77 = vector.extract_strided_slice %53 {offsets = [0, 0], sizes = [16, 8], strides = [1, 1]} : vector<16x32xbf16> to vector<16x8xbf16>
    %78 = vector.extract_strided_slice %65 {offsets = [0, 0], sizes = [16, 8], strides = [1, 1]} : vector<16x32xbf16> to vector<16x8xbf16>
    %cst_20 = arith.constant dense<0.000000e+00> : vector<16x16xf32>
    %79 = tpu.matmul %77, %78, %cst_20 {dimension_numbers = #tpu.dot_dimension_numbers<[1], [1], [0], [0], [0, 0, 1, 0], [], []>} : vector<16x8xbf16>, vector<16x8xbf16>, vector<16x16xf32> -> vector<16x16xf32>
    %80 = arith.addf %76, %79 : vector<16x16xf32>
    %81 = vector.broadcast %73 : vector<1x16xf32> to vector<16x16xf32>
    %82 = arith.addf %80, %81 : vector<16x16xf32>
    %cst_21 = arith.constant dense<0xFF800000> : vector<16xf32>
    %83 = vector.multi_reduction <maximumf>, %82, %cst_21 [1] : vector<16x16xf32> to vector<16xf32>
    %84 = vector.shape_cast %83 : vector<16xf32> to vector<16x1xf32>
    %85 = vector.broadcast %84 : vector<16x1xf32> to vector<16x16xf32>
    %86 = arith.subf %82, %85 : vector<16x16xf32>
    %87 = math.exp %86 : vector<16x16xf32>
    %cst_22 = arith.constant dense<0.000000e+00> : vector<16xf32>
    %88 = vector.multi_reduction <add>, %87, %cst_22 [1] : vector<16x16xf32> to vector<16xf32>
    %89 = vector.shape_cast %88 : vector<16xf32> to vector<16x1xf32>
    %90 = arith.truncf %87 : vector<16x16xf32> to vector<16x16xbf16>
    %91 = vector.extract_strided_slice %10 {offsets = [0, 0], sizes = [16, 16], strides = [1, 1]} : vector<16x64xbf16> to vector<16x16xbf16>
    %cst_23 = arith.constant dense<0.000000e+00> : vector<16x16xf32>
    %92 = tpu.matmul %90, %91, %cst_23 {dimension_numbers = #tpu.dot_dimension_numbers<[1], [0], [0], [1], [0, 0, 1, 1], [], []>} : vector<16x16xbf16>, vector<16x16xbf16>, vector<16x16xf32> -> vector<16x16xf32>
    %93 = tpu.reciprocal %89 {approx = true} : vector<16x1xf32> -> vector<16x1xf32>
    %94 = vector.broadcast %93 : vector<16x1xf32> to vector<16x16xf32>
    %95 = arith.mulf %92, %94 : vector<16x16xf32>
    %c0_24 = arith.constant 0 : index
    %c0_25 = arith.constant 0 : index
    %96 = vector.load %arg10[%c0_24, %c0_25] : memref<16x64xf32, #tpu.memory_space<vmem>>, vector<16x16xf32>
    tpu.vector_store %arg10[%c0_24, %c0_25], %95 {strides = array<i32>} : memref<16x64xf32, #tpu.memory_space<vmem>>, vector<16x16xf32>,
    %97 = vector.extract_strided_slice %47 {offsets = [0, 8], sizes = [16, 8], strides = [1, 1]} : vector<16x32xbf16> to vector<16x8xbf16>
    %98 = vector.extract_strided_slice %59 {offsets = [0, 8], sizes = [16, 8], strides = [1, 1]} : vector<16x32xbf16> to vector<16x8xbf16>
    %cst_26 = arith.constant dense<0.000000e+00> : vector<16x16xf32>
    %99 = tpu.matmul %97, %98, %cst_26 {dimension_numbers = #tpu.dot_dimension_numbers<[1], [1], [0], [0], [0, 0, 1, 0], [], []>} : vector<16x8xbf16>, vector<16x8xbf16>, vector<16x16xf32> -> vector<16x16xf32>
    %100 = vector.extract_strided_slice %53 {offsets = [0, 8], sizes = [16, 8], strides = [1, 1]} : vector<16x32xbf16> to vector<16x8xbf16>
    %101 = vector.extract_strided_slice %65 {offsets = [0, 8], sizes = [16, 8], strides = [1, 1]} : vector<16x32xbf16> to vector<16x8xbf16>
    %cst_27 = arith.constant dense<0.000000e+00> : vector<16x16xf32>
    %102 = tpu.matmul %100, %101, %cst_27 {dimension_numbers = #tpu.dot_dimension_numbers<[1], [1], [0], [0], [0, 0, 1, 0], [], []>} : vector<16x8xbf16>, vector<16x8xbf16>, vector<16x16xf32> -> vector<16x16xf32>
    %103 = arith.addf %99, %102 : vector<16x16xf32>
    %104 = vector.broadcast %73 : vector<1x16xf32> to vector<16x16xf32>
    %105 = arith.addf %103, %104 : vector<16x16xf32>
    %cst_28 = arith.constant dense<0xFF800000> : vector<16xf32>
    %106 = vector.multi_reduction <maximumf>, %105, %cst_28 [1] : vector<16x16xf32> to vector<16xf32>
    %107 = vector.shape_cast %106 : vector<16xf32> to vector<16x1xf32>
    %108 = vector.broadcast %107 : vector<16x1xf32> to vector<16x16xf32>
    %109 = arith.subf %105, %108 : vector<16x16xf32>
    %110 = math.exp %109 : vector<16x16xf32>
    %cst_29 = arith.constant dense<0.000000e+00> : vector<16xf32>
    %111 = vector.multi_reduction <add>, %110, %cst_29 [1] : vector<16x16xf32> to vector<16xf32>
    %112 = vector.shape_cast %111 : vector<16xf32> to vector<16x1xf32>
    %113 = arith.truncf %110 : vector<16x16xf32> to vector<16x16xbf16>
    %114 = vector.extract_strided_slice %10 {offsets = [0, 16], sizes = [16, 16], strides = [1, 1]} : vector<16x64xbf16> to vector<16x16xbf16>
    %cst_30 = arith.constant dense<0.000000e+00> : vector<16x16xf32>
    %115 = tpu.matmul %113, %114, %cst_30 {dimension_numbers = #tpu.dot_dimension_numbers<[1], [0], [0], [1], [0, 0, 1, 1], [], []>} : vector<16x16xbf16>, vector<16x16xbf16>, vector<16x16xf32> -> vector<16x16xf32>
    %116 = tpu.reciprocal %112 {approx = true} : vector<16x1xf32> -> vector<16x1xf32>
    %117 = vector.broadcast %116 : vector<16x1xf32> to vector<16x16xf32>
    %118 = arith.mulf %115, %117 : vector<16x16xf32>
    %c0_31 = arith.constant 0 : index
    %c16 = arith.constant 16 : index
    %119 = vector.load %arg10[%c0_31, %c16] : memref<16x64xf32, #tpu.memory_space<vmem>>, vector<16x16xf32>
    tpu.vector_store %arg10[%c0_31, %c16], %118 {strides = array<i32>} : memref<16x64xf32, #tpu.memory_space<vmem>>, vector<16x16xf32>,
    %120 = vector.extract_strided_slice %47 {offsets = [0, 16], sizes = [16, 8], strides = [1, 1]} : vector<16x32xbf16> to vector<16x8xbf16>
    %121 = vector.extract_strided_slice %59 {offsets = [0, 16], sizes = [16, 8], strides = [1, 1]} : vector<16x32xbf16> to vector<16x8xbf16>
    %cst_32 = arith.constant dense<0.000000e+00> : vector<16x16xf32>
    %122 = tpu.matmul %120, %121, %cst_32 {dimension_numbers = #tpu.dot_dimension_numbers<[1], [1], [0], [0], [0, 0, 1, 0], [], []>} : vector<16x8xbf16>, vector<16x8xbf16>, vector<16x16xf32> -> vector<16x16xf32>
    %123 = vector.extract_strided_slice %53 {offsets = [0, 16], sizes = [16, 8], strides = [1, 1]} : vector<16x32xbf16> to vector<16x8xbf16>
    %124 = vector.extract_strided_slice %65 {offsets = [0, 16], sizes = [16, 8], strides = [1, 1]} : vector<16x32xbf16> to vector<16x8xbf16>
    %cst_33 = arith.constant dense<0.000000e+00> : vector<16x16xf32>
    %125 = tpu.matmul %123, %124, %cst_33 {dimension_numbers = #tpu.dot_dimension_numbers<[1], [1], [0], [0], [0, 0, 1, 0], [], []>} : vector<16x8xbf16>, vector<16x8xbf16>, vector<16x16xf32> -> vector<16x16xf32>
    %126 = arith.addf %122, %125 : vector<16x16xf32>
    %127 = vector.broadcast %73 : vector<1x16xf32> to vector<16x16xf32>
    %128 = arith.addf %126, %127 : vector<16x16xf32>
    %cst_34 = arith.constant dense<0xFF800000> : vector<16xf32>
    %129 = vector.multi_reduction <maximumf>, %128, %cst_34 [1] : vector<16x16xf32> to vector<16xf32>
    %130 = vector.shape_cast %129 : vector<16xf32> to vector<16x1xf32>
    %131 = vector.broadcast %130 : vector<16x1xf32> to vector<16x16xf32>
    %132 = arith.subf %128, %131 : vector<16x16xf32>
    %133 = math.exp %132 : vector<16x16xf32>
    %cst_35 = arith.constant dense<0.000000e+00> : vector<16xf32>
    %134 = vector.multi_reduction <add>, %133, %cst_35 [1] : vector<16x16xf32> to vector<16xf32>
    %135 = vector.shape_cast %134 : vector<16xf32> to vector<16x1xf32>
    %136 = arith.truncf %133 : vector<16x16xf32> to vector<16x16xbf16>
    %137 = vector.extract_strided_slice %10 {offsets = [0, 32], sizes = [16, 16], strides = [1, 1]} : vector<16x64xbf16> to vector<16x16xbf16>
    %cst_36 = arith.constant dense<0.000000e+00> : vector<16x16xf32>
    %138 = tpu.matmul %136, %137, %cst_36 {dimension_numbers = #tpu.dot_dimension_numbers<[1], [0], [0], [1], [0, 0, 1, 1], [], []>} : vector<16x16xbf16>, vector<16x16xbf16>, vector<16x16xf32> -> vector<16x16xf32>
    %139 = tpu.reciprocal %135 {approx = true} : vector<16x1xf32> -> vector<16x1xf32>
    %140 = vector.broadcast %139 : vector<16x1xf32> to vector<16x16xf32>
    %141 = arith.mulf %138, %140 : vector<16x16xf32>
    %c0_37 = arith.constant 0 : index
    %c32_38 = arith.constant 32 : index
    %142 = vector.load %arg10[%c0_37, %c32_38] : memref<16x64xf32, #tpu.memory_space<vmem>>, vector<16x16xf32>
    tpu.vector_store %arg10[%c0_37, %c32_38], %141 {strides = array<i32>} : memref<16x64xf32, #tpu.memory_space<vmem>>, vector<16x16xf32>,
    %143 = vector.extract_strided_slice %47 {offsets = [0, 24], sizes = [16, 8], strides = [1, 1]} : vector<16x32xbf16> to vector<16x8xbf16>
    %144 = vector.extract_strided_slice %59 {offsets = [0, 24], sizes = [16, 8], strides = [1, 1]} : vector<16x32xbf16> to vector<16x8xbf16>
    %cst_39 = arith.constant dense<0.000000e+00> : vector<16x16xf32>
    %145 = tpu.matmul %143, %144, %cst_39 {dimension_numbers = #tpu.dot_dimension_numbers<[1], [1], [0], [0], [0, 0, 1, 0], [], []>} : vector<16x8xbf16>, vector<16x8xbf16>, vector<16x16xf32> -> vector<16x16xf32>
    %146 = vector.extract_strided_slice %53 {offsets = [0, 24], sizes = [16, 8], strides = [1, 1]} : vector<16x32xbf16> to vector<16x8xbf16>
    %147 = vector.extract_strided_slice %65 {offsets = [0, 24], sizes = [16, 8], strides = [1, 1]} : vector<16x32xbf16> to vector<16x8xbf16>
    %cst_40 = arith.constant dense<0.000000e+00> : vector<16x16xf32>
    %148 = tpu.matmul %146, %147, %cst_40 {dimension_numbers = #tpu.dot_dimension_numbers<[1], [1], [0], [0], [0, 0, 1, 0], [], []>} : vector<16x8xbf16>, vector<16x8xbf16>, vector<16x16xf32> -> vector<16x16xf32>
    %149 = arith.addf %145, %148 : vector<16x16xf32>
    %150 = vector.broadcast %73 : vector<1x16xf32> to vector<16x16xf32>
    %151 = arith.addf %149, %150 : vector<16x16xf32>
    %cst_41 = arith.constant dense<0xFF800000> : vector<16xf32>
    %152 = vector.multi_reduction <maximumf>, %151, %cst_41 [1] : vector<16x16xf32> to vector<16xf32>
    %153 = vector.shape_cast %152 : vector<16xf32> to vector<16x1xf32>
    %154 = vector.broadcast %153 : vector<16x1xf32> to vector<16x16xf32>
    %155 = arith.subf %151, %154 : vector<16x16xf32>
    %156 = math.exp %155 : vector<16x16xf32>
    %cst_42 = arith.constant dense<0.000000e+00> : vector<16xf32>
    %157 = vector.multi_reduction <add>, %156, %cst_42 [1] : vector<16x16xf32> to vector<16xf32>
    %158 = vector.shape_cast %157 : vector<16xf32> to vector<16x1xf32>
    %159 = arith.truncf %156 : vector<16x16xf32> to vector<16x16xbf16>
    %160 = vector.extract_strided_slice %10 {offsets = [0, 48], sizes = [16, 16], strides = [1, 1]} : vector<16x64xbf16> to vector<16x16xbf16>
    %cst_43 = arith.constant dense<0.000000e+00> : vector<16x16xf32>
    %161 = tpu.matmul %159, %160, %cst_43 {dimension_numbers = #tpu.dot_dimension_numbers<[1], [0], [0], [1], [0, 0, 1, 1], [], []>} : vector<16x16xbf16>, vector<16x16xbf16>, vector<16x16xf32> -> vector<16x16xf32>
    %162 = tpu.reciprocal %158 {approx = true} : vector<16x1xf32> -> vector<16x1xf32>
    %163 = vector.broadcast %162 : vector<16x1xf32> to vector<16x16xf32>
    %164 = arith.mulf %161, %163 : vector<16x16xf32>
    %c0_44 = arith.constant 0 : index
    %c48 = arith.constant 48 : index
    %165 = vector.load %arg10[%c0_44, %c48] : memref<16x64xf32, #tpu.memory_space<vmem>>, vector<16x16xf32>
    tpu.vector_store %arg10[%c0_44, %c48], %164 {strides = array<i32>} : memref<16x64xf32, #tpu.memory_space<vmem>>, vector<16x16xf32>,
    %c0_45 = arith.constant 0 : index
    %c0_46 = arith.constant 0 : index
    %166 = vector.load %arg10[%c0_45, %c0_46] : memref<16x64xf32, #tpu.memory_space<vmem>>, vector<16x64xf32>
    %167 = arith.truncf %166 : vector<16x64xf32> to vector<16x64xbf16>
    %c0_47 = arith.constant 0 : index
    %c0_48 = arith.constant 0 : index
    %168 = vector.load %arg7[%c0_47, %c0_48] : memref<64x64xbf16, #tpu.memory_space<vmem>>, vector<64x64xbf16>
    %cst_49 = arith.constant dense<0.000000e+00> : vector<16x64xf32>
    %169 = tpu.matmul %167, %168, %cst_49 {dimension_numbers = #tpu.dot_dimension_numbers<[1], [0], [0], [1], [0, 0, 1, 1], [], []>} : vector<16x64xbf16>, vector<64x64xbf16>, vector<16x64xf32> -> vector<16x64xf32>
    %c0_50 = arith.constant 0 : index
    %c0_51 = arith.constant 0 : index
    %170 = vector.load %arg8[%c0_50, %c0_51] : memref<1x64xf32, #tpu.memory_space<vmem>>, vector<1x64xf32>
    %171 = vector.broadcast %170 : vector<1x64xf32> to vector<16x64xf32>
    %172 = arith.addf %169, %171 : vector<16x64xf32>
    %c0_52 = arith.constant 0 : index
    %c0_53 = arith.constant 0 : index
    %173 = vector.load %arg9[%c0_52, %c0_53] : memref<16x64xf32, #tpu.memory_space<vmem>>, vector<16x64xf32>
    tpu.vector_store %arg9[%c0_52, %c0_53], %172 {strides = array<i32>} : memref<16x64xf32, #tpu.memory_space<vmem>>, vector<16x64xf32>,
    return
  }
  func.func @transform_0(%arg0: i32, %arg1: memref<2xi32, #tpu.memory_space<smem>>) -> (i32, i32) {
    %c0_i32 = arith.constant 0 : i32
    %c0_i32_0 = arith.constant 0 : i32
    return %arg0, %c0_i32 : i32, i32
  }
  func.func @transform_1(%arg0: i32, %arg1: memref<2xi32, #tpu.memory_space<smem>>) -> (i32, i32) {
    %c0_i32 = arith.constant 0 : i32
    %c0_i32_0 = arith.constant 0 : i32
    return %arg0, %c0_i32 : i32, i32
  }
  func.func @transform_2(%arg0: i32, %arg1: memref<2xi32, #tpu.memory_space<smem>>) -> (i32, i32) {
    %c0_i32 = arith.constant 0 : i32
    %c0_i32_0 = arith.constant 0 : i32
    %c0_i32_1 = arith.constant 0 : i32
    return %c0_i32, %c0_i32_0 : i32, i32
  }
  func.func @transform_3(%arg0: i32, %arg1: memref<2xi32, #tpu.memory_space<smem>>) -> (i32, i32) {
    %c0_i32 = arith.constant 0 : i32
    %c0_i32_0 = arith.constant 0 : i32
    %c0_i32_1 = arith.constant 0 : i32
    return %c0_i32, %c0_i32_0 : i32, i32
  }
  func.func @transform_4(%arg0: i32, %arg1: memref<2xi32, #tpu.memory_space<smem>>) -> (i32, i32) {
    %c0_i32 = arith.constant 0 : i32
    %c0_i32_0 = arith.constant 0 : i32
    %c0_i32_1 = arith.constant 0 : i32
    return %c0_i32, %c0_i32_0 : i32, i32
  }
  func.func @transform_5(%arg0: i32, %arg1: memref<2xi32, #tpu.memory_space<smem>>) -> (i32, i32) {
    %c0_i32 = arith.constant 0 : i32
    %c0_i32_0 = arith.constant 0 : i32
    %c0_i32_1 = arith.constant 0 : i32
    return %c0_i32, %c0_i32_0 : i32, i32
  }
  func.func @transform_6(%arg0: i32, %arg1: memref<2xi32, #tpu.memory_space<smem>>) -> (i32, i32) {
    %c0_i32 = arith.constant 0 : i32
    %c0_i32_0 = arith.constant 0 : i32
    %c0_i32_1 = arith.constant 0 : i32
    return %c0_i32, %c0_i32_0 : i32, i32
  }
  func.func @transform_7(%arg0: i32, %arg1: memref<2xi32, #tpu.memory_space<smem>>) -> (i32, i32) {
    %c0_i32 = arith.constant 0 : i32
    %c0_i32_0 = arith.constant 0 : i32
    return %arg0, %c0_i32 : i32, i32
  }
}

</mosaic_0001>

<bundles_post_ra>
// kernel: tpu_custom_call.1
= control target key start
LH: loop header
LB: loop body
LE: loop exit
PB: predicated region body
PF: predicated region fallthrough
CT: control target
= control target key end

     0   :  { %s2080_s27 = smov [#allocation4]   ;;  %s2642_s0 = inlined_call_operand.hbm [shape: s32[2], index: 0, kind: input, shape index: {}]   ;;  %s2643_s1 = inlined_call_operand.hbm [shape: f32[32,64], index: 1, kind: input, shape index: {}]   ;;  %s2644_s2 = inlined_call_operand.hbm [shape: f32[32,64], index: 2, kind: input, shape index: {}]   ;;  %s2645_s3 = inlined_call_operand.vmem [shape: f32[1,128], index: 3, kind: input, shape index: {}]   ;;  %s2646_s4 = inlined_call_operand.hbm [shape: bf16[64,192], index: 4, kind: input, shape index: {}]   ;;  %s2647_s5 = inlined_call_operand.vmem [shape: f32[1,192], index: 5, kind: input, shape index: {}]   ;;  %s2648_s6 = inlined_call_operand.hbm [shape: bf16[64,64], index: 6, kind: input, shape index: {}]   ;;  %s2649_s7 = inlined_call_operand.vmem [shape: f32[1,64], index: 7, kind: input, shape index: {}]   ;;  %s2650_s8 = inlined_call_operand.hbm [shape: f32[32,64], index: 8, kind: output, shape index: {}]  }
   0x1   :  { %2658 = sst [smem:[#allocation21_spill]] %s2643_s1 }
   0x2   :  { %2659 = sst [smem:[#allocation22_spill]] %s2646_s4 }
   0x3   :  { %2660 = sst [smem:[#allocation23_spill]] %s2648_s6 }
   0x4   :  { %14 = dma.hbm_to_smem %s2642_s0, 16, %s2080_s27, [#allocation3] }
   0x5   :  { %2042 = dma.done.wait [#allocation3], 16 }
   0x6   :  { %2043 = vsyncadd [#allocation3], 4294967280 }
   0x7   :  { %16 = sfence }
   0x8   :  { %17 = vsyncpa [#allocation6], 0 }
   0x9   :  { %19 = vsyncpa [#allocation6 + $0x1], 0 }
   0xa   :  { %20 = vsyncpa [#allocation9], 0 }
   0xb   :  { %22 = vsyncpa [#allocation9 + $0x1], 0 }
   0xc   :  { %23 = vsyncpa [#allocation12], 0 }
   0xd   :  { %24 = vsyncpa [#allocation7], 0 }
   0xe   :  { %26 = vsyncpa [#allocation7 + $0x1], 0  ;;  %s2155_s30 = smov 0   ;;  %s2157_s9 = smov 0  }
   0xf   :  { %s2159_s10 = smov 0   ;;  %s2161_s11 = smov 0  }
  0x10 LB: > { %s2176_s0 = sadd.s32 4294967295, %s2078_s11   ;;  %s1568_s12 = sadd.s32 4294967294, %s2078_s11   ;;  %s2078_s11 = sphi %s2161_s11, %s2685_s11   ;;  %s2074_s10 = sphi %s2159_s10, %s2684_s10   ;;  %s2070_s9 = sphi %s2157_s9, %s2683_s9   ;;  %s2066_s30 = sphi %s2155_s30, %s2682_s30  }
  0x11   : > { %p52_p0 = scmp.ne.s32.totalorder %s2070_s9, %s2066_s30  ;;  %p2655_p1 = scmp.eq.s32.totalorder %s2176_s0, 0 }
  0x12   : > { %p207_p2 = scmp.eq.s32.totalorder %s2176_s0, 1  ;;  %p213_p3 = scmp.eq.s32.totalorder %s1568_s12, 1 }
  0x13   : > { %p2185_p4 = por %p2655_p1, %p52_p0  ;;  %p1569_p5 = scmp.ge.s32.totalorder %s2078_s11, 1 }
  0x14   : > { %p2190_p6 = por %p213_p3, %p52_p0  ;;  %p220_p7 = scmp.lt.s32.totalorder %s2078_s11, 3 }
  0x15   : > { %s2661_s13 = scalar_select %p2185_p4, 1, 0 }
  0x16   : > { %s2662_s14 = scalar_select %p2190_p6, 1, 0 }
  0x17   : > { %p2195_p8 = pnand %p1569_p5, %p220_p7  ;;  %s2081_s16 = smov [#allocation10]  }
  0x18   : > { %s235_s17 = sshll.u32 %s2081_s16, 4  ;;  %s2082_s19 = smov [#allocation11]   ;;  %s236_s17 = int_to_ptr.vmem [resolvable:$true] %s235_s17 }
  0x19   : > { %p1748_p9 = pneg %p2195_p8  ;;  %s251_s20 = sshll.u32 %s2082_s19, 4  ;;  %s252_s20 = int_to_ptr.vmem [resolvable:$true] %s251_s20 }
  0x1a   : > { %s1903_s21 = scalar_lea.vmem %s236_s17, 1024  ;;  %p1911_p5 = scmp.lt.s32.totalorder %s236_s17, %s236_s17 }
  0x1b   : > { %p2204_p11 = pnand %p1748_p9, %p2655_p1  ;;  %p1904_p13 = scmp.ne.s32.totalorder %s236_s17, %s1903_s21 }
  0x1c   : > { %p1912_p7 = scmp.lt.s32.totalorder %s1903_s21, %s1903_s21 }
  0x1d   : > { %p1894_p12 = pneg %p2204_p11 }
  0x1e   : > { %p1913_p10 = por %p1912_p7, %p1911_p5 }
  0x1f   : > { %p1906_p0 = pnand %p1904_p13, %p1894_p12 }
  0x21   : > { %p1907_p3 = pneg %p1906_p0 }
  0x23   : > { %p1914_p9 = pnand %p1913_p10, %p1907_p3 }
  0x25   : > { %1917 = shalt.err (!%p1914_p9)
}
  0x26   : > { %s2651_s22 = smov 128   ;;  %s2653_s23 = smov 8  }
  0x27   : > { %s2665_s4 = sld [smem:[#allocation22_spill]]  ;;  %s1929_s26 = scalar_lea.vmem %s252_s20, 512 }
  0x28   : > { %p1930_p13 = scmp.ne.s32.totalorder %s252_s20, %s1929_s26  ;;  %p1937_p10 = scmp.lt.s32.totalorder %s252_s20, %s252_s20 }
  0x29   : > { %p1938_p3 = scmp.lt.s32.totalorder %s1929_s26, %s1929_s26 }
  0x2a   : > { %p1932_p0 = pnand %p1930_p13, %p1894_p12 }
  0x2b   : > { %p1939_p7 = por %p1938_p3, %p1937_p10 }
  0x2c   : > { %p1933_p5 = pneg %p1932_p0 }
  0x2d   : > { %1751 = dma.hbm_to_vmem [thread:$0]  (!%p2204_p11), %s2665_s4, 1024, %s236_s17, [#allocation9], %s2651_s22, %s2651_s22, %s2653_s23  }
  0x2e   : > { %p1940_p9 = pnand %p1939_p7, %p1933_p5 }
  0x30   : > { %1943 = shalt.err (!%p1940_p9)
}
  0x31   : > { %s2085_s27 = smov 64   ;;  %s2086_s28 = smov 4  }
  0x32   : > { %s2666_s6 = sld [smem:[#allocation23_spill]]  ;;  %s2230_s16 = sadd.s32 1, %s2078_s11  }
  0x33   : > { %s36_s17 = ssub.s32 %s2078_s11, %s2230_s16  ;;  %s39_s19 = sadd.s32 1, %s2074_s10 }
  0x34   : > { %p37_p12 = scmp.eq.s32.totalorder %s36_s17, 0  ;;  %p46_p13 = scmp.ne.s32.totalorder %s2074_s10, %s2070_s9 }
  0x35   : > { %p47_p0 = scmp.eq.s32.totalorder %s2078_s11, 0  ;;  %p1768_p3 = scmp.lt.s32.totalorder %s2078_s11, 2 }
  0x36   : > { %s2239_s21 = scalar_select %p37_p12, %s2074_s10, %s39_s19  }
  0x37   : > { %p48_p5 = por %p47_p0, %p46_p13  ;;  %p2243_p10 = por %p207_p2, %p46_p13 }
  0x38   : > { %1754 = dma.hbm_to_vmem [thread:$0]  (!%p2204_p11), %s2666_s6, 512, %s252_s20, [#allocation12], %s2085_s27, %s2085_s27, %s2086_s28  }
  0x39   : > { %2667 = sst [smem:[#allocation20_spill]] %s2239_s21  ;;  %s268_s18 = sand.u32 1, %s2074_s10  }
  0x3a   : > { %s2668_s24 = scalar_select %p2243_p10, 1, 0 }
  0x3b   : > { %s1573_s25 = sshll.u32 %s268_s18, 4  ;;  %s1618_s20 = sshll.u32 %s2078_s11, 8 }
  0x3c   : > { %s2669_s1 = sld [smem:[#allocation21_spill]]  ;;  %s272_s29 = scalar_lea.vmem [#allocation5], %s1573_s25 }
  0x3d   : > { %s279_s12 = sshll.u32 %s272_s29, 4  ;;  %p2257_p2 = pnand %p1768_p3, %p48_p5  ;;  %s2255_s12 = int_to_ptr.vmem [resolvable:$true] %s279_s12 }
  0x3e   : > { %s2264_s23 = scalar_lea.hbm %s2644_s2, %s1618_s20  ;;  %s293_s26 = scalar_lea.vmem [#allocation8], %s1573_s25 }
  0x3f   : > { %s2266_s27 = sshll.u32 %s293_s26, 4  ;;  %s2268_s4 = scalar_lea.sflag [#allocation6], %s268_s18  ;;  %s2299_s27 = int_to_ptr.vmem [resolvable:$true] %s2266_s27 }
  0x40   : > { %p1946_p7 = pneg %p2257_p2 }
  0x42   : > { %s2253_s28 = scalar_lea.hbm %s2669_s1, %s1618_s20  ;;  %s1949_s22 = scalar_lea.hbm %s2669_s1, 512 }
  0x43   : > { %s1944_s6 = scalar_lea.hbm %s2253_s28, 256  ;;  %p1950_p13 = scmp.lt.s32.totalorder %s2253_s28, %s2669_s1 }
  0x44   : > { %p1945_p11 = scmp.ne.s32.totalorder %s2253_s28, %s1944_s6  ;;  %p1951_p0 = scmp.lt.s32.totalorder %s1949_s22, %s1944_s6 }
  0x46   : > { %p1947_p9 = pnand %p1946_p7, %p1945_p11  ;;  %p1952_p5 = por %p1951_p0, %p1950_p13 }
  0x48   : > { %p1948_p12 = pneg %p1947_p9 }
  0x4a   : > { %p1953_p3 = pnand %p1952_p5, %p1948_p12 }
  0x4c   : > { %1956 = shalt.err (!%p1953_p3)
}
  0x4d   : > { %s1957_s18 = scalar_lea.vmem %s2255_s12, 256  ;;  %s2087_s21 = smov [#allocation5]  }
  0x4e   : > { %p1958_p1 = scmp.ne.s32.totalorder %s2255_s12, %s1957_s18  ;;  %s1962_s25 = sshll.u32 %s2087_s21, 4  ;;  %s1963_s25 = int_to_ptr.vmem [resolvable:$false] %s1962_s25 }
  0x4f   : > { %s1964_s26 = scalar_lea.vmem %s1963_s25, 512  ;;  %p1965_p6 = scmp.lt.s32.totalorder %s2255_s12, %s1963_s25 }
  0x50   : > { %p1960_p11 = pnand %p1958_p1, %p1946_p7  ;;  %p1966_p10 = scmp.lt.s32.totalorder %s1964_s26, %s1957_s18 }
  0x52   : > { %p1961_p9 = pneg %p1960_p11  ;;  %p1967_p4 = por %p1966_p10, %p1965_p6 }
  0x54   : > { %p1968_p13 = pnand %p1967_p4, %p1961_p9 }
  0x56   : > { %1971 = shalt.err (!%p1968_p13)
}
  0x57   : > { %s2671_s6 = smov 8   ;;  %s2672_s29 = smov 128  }
  0x58   : > { %1758 = dma.hbm_to_vmem [thread:$0]  (!%p2257_p2), %s2253_s28, 256, %s2255_s12, %s2268_s4, %s2672_s29, %s2672_s29, %s2671_s6  }
  0x59   : > { %s289_s22 = sand.u32 1, %s2078_s11   ;;  %s1972_s20 = scalar_lea.hbm %s2264_s23, 256 }
  0x5a   : > { %s290_s19 = scalar_lea.sflag [#allocation9], %s289_s22  ;;  %p1973_p1 = scmp.ne.s32.totalorder %s2264_s23, %s1972_s20 }
  0x5b   : > { %s1977_s25 = scalar_lea.hbm %s2644_s2, 512  ;;  %p1978_p10 = scmp.lt.s32.totalorder %s2264_s23, %s2644_s2 }
  0x5c   : > { %p1975_p4 = pnand %p1973_p1, %p1946_p7  ;;  %p1979_p12 = scmp.lt.s32.totalorder %s1977_s25, %s1972_s20 }
  0x5e   : > { %p1976_p6 = pneg %p1975_p4  ;;  %p1980_p0 = por %p1979_p12, %p1978_p10 }
  0x60   : > { %p1981_p5 = pnand %p1980_p0, %p1976_p6 }
  0x62   : > { %1984 = shalt.err (!%p1981_p5)
}
  0x63   : > { %s1985_s4 = scalar_lea.vmem %s2299_s27, 256  ;;  %s2088_s28 = smov [#allocation8]  }
  0x64   : > { %p1986_p3 = scmp.ne.s32.totalorder %s2299_s27, %s1985_s4  ;;  %s1990_s12 = sshll.u32 %s2088_s28, 4  ;;  %s1991_s12 = int_to_ptr.vmem [resolvable:$false] %s1990_s12 }
  0x65   : > { %s1992_s22 = scalar_lea.vmem %s1991_s12, 512  ;;  %p1993_p13 = scmp.lt.s32.totalorder %s2299_s27, %s1991_s12 }
  0x66   : > { %p1988_p11 = pnand %p1986_p3, %p1946_p7  ;;  %p1994_p1 = scmp.lt.s32.totalorder %s1992_s22, %s1985_s4 }
  0x68   : > { %p1989_p9 = pneg %p1988_p11  ;;  %p1995_p4 = por %p1994_p1, %p1993_p13 }
  0x6a   : > { %p1996_p10 = pnand %p1995_p4, %p1989_p9 }
  0x6c   : > { %1999 = shalt.err (!%p1996_p10)
}
  0x6d   : > { %1761 = dma.hbm_to_vmem [thread:$0]  (!%p2257_p2), %s2264_s23, 256, %s2299_s27, %s290_s19, %s2672_s29, %s2672_s29, %s2671_s6  }
  0x6e   : > { %312 = sbr.rel (%p2195_p8) target bundleno = 2754 (0xac2), region = 48  ;;  %s2330_s1 = sand.u32 (!%p2195_p8), 1, %s2070_s9  }
  0x6f   : > { %s2333_s20 = sshll.u32 (!%p2195_p8), %s2330_s1, 4  ;;  %s315_s18 = scalar_lea.sflag (!%p2195_p8), [#allocation6], %s2330_s1 }
  0x70   : > { %s318_s17 = scalar_lea.vmem (!%p2195_p8), [#allocation5], %s2333_s20  ;;  %p2673_p7 = scmp.ne.s32.totalorder (!%p2195_p8), %s2661_s13, 0 }
  0x73   : > { %2045 = dma.done.wait (%p2673_p7), %s315_s18, 256  }
  0x74   : > { %2047 = vsyncadd (%p2673_p7), %s315_s18, 4294967040  ;;  %s323_s15 = sand.u32 1, %s2176_s0   ;;  %s327_s27 = scalar_lea.vmem [#allocation8], %s2333_s20 }
  0x75   : > { %s324_s23 = scalar_lea.sflag [#allocation9], %s323_s15 }
  0x76   : > { %2049 = dma.done.wait (%p2673_p7), %s324_s23, 256  }
  0x77   : > { %2051 = vsyncadd (%p2673_p7), %s324_s23, 4294967040  ;;  %p2674_p8 = scmp.eq.s32.totalorder %s2176_s0, 0 }
  0x79   : > { %2053 = dma.done.wait (%p2674_p8), [#allocation9], 1024   ;;  %p2675_p2 = pmov %p2674_p8 }
  0x7b   : > { %2055 = vsyncadd (%p2675_p2), [#allocation9], 4294966272  ;;  %p2676_p6 = pmov %p2675_p2 }
  0x7c   : > { %p2677_p12 = pmov %p2675_p2 }
  0x7d   : > { %2057 = dma.done.wait (%p2676_p6), [#allocation12], 512  }
  0x7e   : > { %2059 = vsyncadd (%p2677_p12), [#allocation12], 4294966784  ;;  %v2089_v0 = vmov 0   ;;  %v1828_v1 = vld [vmem:[#allocation10 + $0x34] ss:$8 sps:$4 sm:$0xff]   ;;  %s2090_s13 = smov 96   ;;  %v388_v14 = vlaneseq }
  0x7f   : > { %474 = vmatprep.mubr.bf16.mxu0 %v2089_v0  ;;  %v1830_v2 = vld [vmem:[#allocation10 + $0x30] ss:$8 sps:$4 sm:$0xff]   ;;  %450 = vmatprep.subr.bf16.mxu0 %v1828_v1  ;;  %v1831_v3 = vld [vmem:[#allocation10 + $0x24] ss:$8 sps:$4 sm:$0xff]   ;;  %v1833_v4 = vld [vmem:[#allocation10 + $0x20] ss:$8 sps:$4 sm:$0xff]  }
  0x80   : > { %451 = vmatpush1.bf16.msra.mxu0 %v1830_v2  ;;  %v1834_v5 = vld [vmem:[#allocation10 + $0x14] ss:$8 sps:$4 sm:$0xff]   ;;  %v1836_v6 = vld [vmem:[#allocation10 + $0x10] ss:$8 sps:$4 sm:$0xff]   ;;  %v1837_v7 = vld [vmem:[#allocation10 + $0x4] ss:$8 sps:$4 sm:$0xff]  }
  0x81   : > { %452 = vmatprep.subr.bf16.mxu0 %v1831_v3  ;;  %v2355_v8 = vld [vmem:[%s327_s27] sm:$0xff]  ;;  %v2357_v9 = vld [vmem:[%s327_s27 + $0x8] sm:$0xff]  ;;  %vm438_vm0 = vcmask 523264   ;;  %s2091_s6 = smov 64   ;;  %s2092_s29 = smov 32   ;;  %v2373_v15 = vshrl.u32 %v388_v14, 7 }
  0x82   : > { %551 = vrot.lane.b32.xlu1 %v2355_v8, %s2090_s13  ;;  %v1839_v10 = vld [vmem:[#allocation10] ss:$8 sps:$4 sm:$0xff]   ;;  %v2379_v17 = vld [vmem:[%s2647_s5] sm:$0x3]  ;;  %v2093_v54 = vmov 0.0   ;;  %vm2094_vm1 = vmmov 0  }
  0x83   : > { %v375_v11 = vld [vmem:[%s318_s17] sm:$0xff]  ;;  %v376_v12 = vld [vmem:[%s318_s17 + $0x8] sm:$0xff]  ;;  %v390_v16 = vsub.s32 0, %v2373_v15  ;;  %1650 = vmatprep.subr.bf16.mxu1 %v2093_v54  ;;  %1652 = vmatprep.mubr.msk.bf16.mxu1 %vm2094_vm1, %v2093_v54  ;;  %vm623_vm2 = vcmask 64512   ;;  %s616_s4 = sld [smem:[#allocation4 + %s2176_s0]]  ;;  %vm723_vm4 = vcmask 130048  }
  0x84   : > { %453 = vmatpush1.bf16.msra.mxu0 %v1833_v4  ;;  %v377_v13 = vpack.c.bf16 %v376_v12, %v375_v11  ;;  %v1594_v20 = vld [vmem:[%s2645_s3] ss:$0 sm:$0xff]  ;;  %s2096_s28 = smov 56   ;;  %s2097_s12 = smov 120   ;;  %vm978_vm5 = vcmask 261248   ;;  %vm1163_vm6 = vcmask 392448  }
  0x85   : > { %454 = vmatprep.subr.bf16.mxu0 %v1834_v5  ;;  %v391_v18 = vrot.slane %v2379_v17, %v390_v16  ;;  %s2098_s22 = smov 48   ;;  %s2099_s18 = smov 112   ;;  %vm1348_vm7 = vcmask 523648  }
  0x86   : > { %553 = vrot.lane.b32.xlu1 %v2357_v9, %s2090_s13  ;;  %s2100_s17 = smov 40   ;;  %s2101_s15 = smov 104  }
  0x87   : > { %s2102_s23 = smov 80   ;;  %s2103_s27 = smov 16  }
  0x88   : > { %455 = vmatpush1.bf16.msra.mxu0 %v1836_v6  ;;  %s1620_s21 = sshll.u32 %s2176_s0, 8  ;;  %p2678_p5 = scmp.ne.s32.totalorder %s2668_s24, 0 }
  0x89   : > { %456 = vmatprep.subr.bf16.mxu0 %v1837_v7 }
  0x8a   : > { %582 = vrot.lane.b32.xlu1 %v2357_v9, %s2091_s6 }
  0x8c   : > { %457 = vmatpush1.bf16.msra.mxu0 %v1839_v10 }
  0x8d   : > { %1674 = vmatprep.subr.bf16.mxu0 %v2093_v54 }
  0x8e   : > { %561 = vrot.lane.b32.xlu1 %v2357_v9, %s2092_s29 }
  0x8f   : > { %1593 = vmatmul.mubr.msk.bf16.vlgmr.msra.gmra.mxu0 %vm438_vm0, %v377_v13 }
  0x90   : > { %1676 = vmatprep.mubr.msk.bf16.mxu0 %vm2094_vm1, %v2093_v54 }
  0xf4   : > { %v552_v22 = vpop.permute.xlu1 %551 }
  0xf8   : > { %v554_v30 = vpop.permute.xlu1 %553 }
  0xfc   : > { %v583_v36 = vpop.permute.xlu1 %582 }
 0x100   : > { %v562_v45 = vpop.permute.xlu1 %561 }
 0x14f   : > { %v476_v19 = vpop.f32.mrf.mxu0 }
 0x150   : > { %v477_v21 = vadd.f32 %v476_v19, %v391_v18 }
 0x151   : > { %v2385_v23 = vpop.f32.mrf.mxu0 }
 0x152   : > { %v2387_v24 = vmul.f32 %v1594_v20, %v477_v21  ;;  %v486_v25 = vmul.f32 %v477_v21, %v477_v21 }
 0x153   : > { %v480_v26 = vpop.f32.mrf.mxu0 }
 0x154   : > { %v481_v27 = vadd.f32 %v480_v26, %v391_v18  ;;  %505 = vrot.lane.b32.xlu0 %v486_v25, %s2091_s6  ;;  %v2402_v38 = vmul.f32 %v552_v22, %v2387_v24  ;;  %v488_v42 = vsel %vm438_vm0, %v486_v25, 0.0  ;;  %v534_v7 = vmul.f32 %v2355_v8, %v2387_v24 }
 0x156   : > { %v487_v28 = vmul.f32 %v481_v27, %v481_v27  ;;  %v531_v29 = vmul.f32 %v1594_v20, %v481_v27 }
 0x158   : > { %507 = vrot.lane.b32.xlu0 %v487_v28, %s2091_s6  ;;  %v2391_v31 = vmul.f32 %v554_v30, %v531_v29  ;;  %v587_v37 = vmul.f32 %v583_v36, %v531_v29  ;;  %v491_v41 = vsel %vm438_vm0, %v487_v28, 0.0  ;;  %v566_v58 = vmul.f32 %v562_v45, %v531_v29 }
 0x159   : > { %v535_v6 = vmul.f32 %v2357_v9, %v531_v29  ;;  %v615_v45 = vand.u32 127, %v388_v14 }
 0x15a   : > { %605 = vrot.lane.b32.xlu1 %v2391_v31, %s2090_s13 }
 0x15c   : > { %580 = vrot.lane.b32.xlu0 %v2355_v8, %s2091_s6 }
 0x160   : > { %559 = vrot.lane.b32.xlu0 %v2355_v8, %s2092_s29 }
 0x1c6   : > { %v506_v32 = vpop.permute.xlu0 %505 }
 0x1c7   : > { %v511_v33 = vsel %vm438_vm0, %v506_v32, 0.0  ;;  %v394_v32 = vsub.s32 1, %v2373_v15 }
 0x1c8   : > { %512 = vadd.xlane.f32.xlu0 %v511_v33 }
 0x1ca   : > { %v508_v34 = vpop.permute.xlu0 %507 }
 0x1cb   : > { %v514_v35 = vsel %vm438_vm0, %v508_v34, 0.0 }
 0x1cc   : > { %515 = vadd.xlane.f32.xlu1 %v514_v35  ;;  %v606_v46 = vpop.permute.xlu1 %605 }
 0x1cd   : > { %v610_v60 = vadd.f32 %v606_v46, %v566_v58  ;;  %v617_v46 = vstv %s616_s4  ;;  %s2598_s4 = scalar_lea.hbm %s2650_s8, %s1620_s21 }
 0x1ce   : > { %v581_v39 = vpop.permute.xlu0 %580  ;;  %vm618_vm3 = vcmp.lt.s32.totalorder %v615_v45, %v617_v46 }
 0x1cf   : > { %v586_v40 = vmul.f32 %v581_v39, %v2387_v24 }
 0x1d2   : > { %v560_v43 = vpop.permute.xlu0 %559 }
 0x1d3   : > { %v565_v44 = vmul.f32 %v560_v43, %v2387_v24 }
 0x1dd   : > { %592 = vrot.lane.b32.xlu1 %v587_v37, %s2090_s13 }
 0x1de   : > { %603 = vrot.lane.b32.xlu0 %v2402_v38, %s2090_s13 }
 0x1e2   : > { %590 = vrot.lane.b32.xlu0 %v586_v40, %s2090_s13 }
 0x201   : > { %492 = vadd.xlane.f32.xlu1 %v491_v41  ;;  %489 = vadd.xlane.f32.xlu0 %v488_v42 }
 0x212   : > { %569 = vrot.lane.b32.xlu1 %v565_v44, %s2090_s13 }
 0x251   : > { %v513_v47 = vpop.xlane.xlu0 %512 }
 0x252   : > { %v517_v48 = vmul.f32 0.015625, %v513_v47 }
 0x254   : > { %v519_v49 = vadd.f32 1e-06, %v517_v48 }
 0x255   : > { %v516_v50 = vpop.xlane.xlu1 %515  ;;  %v604_v53 = vpop.permute.xlu0 %603 }
 0x256   : > { %v518_v51 = vmul.f32 0.015625, %v516_v50  ;;  %1844 = vrsqrt.f32 %v519_v49  ;;  %v609_v59 = vadd.f32 %v604_v53, %v565_v44  ;;  %v2095_v49 = vmov -1e+30  }
 0x257   : > { %v2460_v50 = vsel %vm618_vm3, 0.0, %v2095_v49 }
 0x258   : > { %v520_v52 = vadd.f32 1e-06, %v518_v51 }
 0x259   : > { %v593_v55 = vpop.permute.xlu1 %592  ;;  %v591_v56 = vpop.permute.xlu0 %590 }
 0x25a   : > { %1846 = vrsqrt.f32 %v520_v52  ;;  %v597_v61 = vsub.f32 %v587_v37, %v593_v55  ;;  %v596_v62 = vsub.f32 %v586_v40, %v591_v56  ;;  %v482_v37 = vpop.f32.mrf.mxu0 }
 0x263   : > { %v1845_v57 = vpop.eup %1844 }
 0x264   : > { %v611_v0 = vmul.f32 %v1845_v57, %v609_v59  ;;  %v598_v3 = vmul.f32 %v1845_v57, %v596_v62 }
 0x267   : > { %v1847_v63 = vpop.eup %1846 }
 0x268   : > { %v612_v1 = vmul.f32 %v1847_v63, %v610_v60  ;;  %v599_v2 = vmul.f32 %v1847_v63, %v597_v61 }
 0x26a   : > { %v2419_v4 = vpack.c.bf16 %v612_v1, %v611_v0  ;;  %v2421_v5 = vpack.c.bf16 %v599_v2, %v598_v3 }
 0x26c   : > { %672 = vrot.lane.b32.xlu1 %v2421_v5, %s2091_s6  ;;  %621 = vrot.lane.b32.xlu0 %v2419_v4, %s2091_s6 }
 0x270   : > { %540 = vrot.lane.b32.xlu1 %v535_v6, %s2090_s13  ;;  %571 = vrot.lane.b32.xlu0 %v566_v58, %s2090_s13 }
 0x274   : > { %538 = vrot.lane.b32.xlu0 %v534_v7, %s2090_s13 }
 0x28a   : > { %v490_v10 = vpop.xlane.xlu0 %489  ;;  %v493_v11 = vpop.xlane.xlu1 %492 }
 0x28b   : > { %v495_v12 = vmul.f32 0.015625, %v490_v10  ;;  %v496_v13 = vmul.f32 0.015625, %v493_v11 }
 0x28d   : > { %v497_v16 = vadd.f32 1e-06, %v495_v12  ;;  %v498_v18 = vadd.f32 1e-06, %v496_v13 }
 0x28e   : > { %v570_v19 = vpop.permute.xlu1 %569 }
 0x28f   : > { %1848 = vrsqrt.f32 %v497_v16  ;;  %v575_v26 = vadd.f32 %v570_v19, %v2402_v38  ;;  %v395_v38 = vrot.slane %v2379_v17, %v394_v32 }
 0x290   : > { %1850 = vrsqrt.f32 %v498_v18 }
 0x291   : > { %v479_v42 = vadd.f32 %v2385_v23, %v395_v38 }
 0x29c   : > { %v1849_v9 = vpop.eup %1848 }
 0x29d   : > { %v1851_v22 = vpop.eup %1850  ;;  %v501_v8 = vmul.f32 0.25, %v1849_v9 }
 0x29e   : > { %v502_v27 = vmul.f32 0.25, %v1851_v22 }
 0x29f   : > { %v577_v29 = vmul.f32 %v575_v26, %v501_v8 }
 0x2de   : > { %v622_v20 = vpop.permute.xlu0 %621  ;;  %v673_v25 = vpop.permute.xlu1 %672 }
 0x2df   : > { %v628_v21 = vsel %vm623_vm2, %v622_v20, 0  ;;  %v678_v39 = vsel %vm623_vm2, %v673_v25, 0 }
 0x2e0   : > { %1651 = vmatpush3.bf16.xpose.msra.mxu1 %v628_v21 }
 0x2e1   : > { %1656 = vmatprep.subr.bf16.mxu1 %v2093_v54 }
 0x2e2   : > { %v572_v24 = vpop.permute.xlu0 %571  ;;  %v541_v33 = vpop.permute.xlu1 %540 }
 0x2e3   : > { %v576_v28 = vadd.f32 %v572_v24, %v2391_v31  ;;  %v545_v40 = vsub.f32 %v535_v6, %v541_v33  ;;  %v483_v31 = vadd.f32 %v482_v37, %v395_v38 }
 0x2e5   : > { %v578_v30 = vmul.f32 %v576_v28, %v502_v27  ;;  %v547_v41 = vmul.f32 %v545_v40, %v502_v27  ;;  %v2450_v44 = vpack.c.bf16 %v483_v31, %v479_v42 }
 0x2e6   : > { %v539_v34 = vpop.permute.xlu0 %538 }
 0x2e7   : > { %v2438_v35 = vpack.c.bf16 %v578_v30, %v577_v29  ;;  %v544_v36 = vsub.f32 %v534_v7, %v539_v34 }
 0x2e9   : > { %1653 = vmatmul.mubr.msk.bf16.vlgmr.msra.gmra.mxu1 %vm623_vm2, %v2438_v35  ;;  %v546_v15 = vmul.f32 %v544_v36, %v501_v8 }
 0x2ea   : > { %1657 = vmatpush3.bf16.xpose.msra.mxu1 %v678_v39  ;;  %1658 = vmatprep.mubr.msk.bf16.mxu1 %vm2094_vm1, %v2093_v54 }
 0x2eb   : > { %1662 = vmatprep.subr.bf16.mxu1 %v2093_v54  ;;  %v2448_v43 = vpack.c.bf16 %v547_v41, %v546_v15 }
 0x2f1   : > { %1659 = vmatmul.mubr.msk.bf16.vlgmr.msra.gmra.mxu1 %vm623_vm2, %v2448_v43 }
 0x2f2   : > { %1663 = vmatpush3.bf16.msra.mxu1 %v2450_v44  ;;  %1664 = vmatprep.mubr.msk.bf16.mxu1 %vm2094_vm1, %v2093_v54 }
 0x2f3   : > { %1668 = vmatprep.subr.bf16.mxu1 %v2093_v54 }
 0x3a9   : > { %v664_v17 = vpop.f32.mrf.mxu1 }
 0x3ab   : > { %v1654_v23 = vpop.f32.mrf.mxu1 }
 0x3ad   : > { %v667_v47 = vpop.f32.mrf.mxu1 }
 0x3af   : > { %v1655_v48 = vpop.f32.mrf.mxu1 }
 0x3b1   : > { %v714_v51 = vpop.f32.mrf.mxu1 }
 0x3b2   : > { %v715_v52 = vadd.f32 %v714_v51, %v664_v17 }
 0x3b3   : > { %v1660_v53 = vpop.f32.mrf.mxu1 }
 0x3b4   : > { %v721_v55 = vadd.f32 %v715_v52, %v2460_v50 }
 0x3b5   : > { %v717_v56 = vpop.f32.mrf.mxu1 }
 0x3b6   : > { %v718_v57 = vadd.f32 %v717_v56, %v667_v47  ;;  %v724_v58 = vsel %vm723_vm4, %v721_v55, -inf }
 0x3b7   : > { %725 = vmax.xlane.f32.xlu0 %v724_v58  ;;  %v1661_v14 = vpop.f32.mrf.mxu1 }
 0x3b8   : > { %v722_v59 = vadd.f32 %v718_v57, %v2460_v50 }
 0x3ba   : > { %v727_v60 = vsel %vm723_vm4, %v722_v59, -inf }
 0x3bb   : > { %728 = vmax.xlane.f32.xlu1 %v727_v60 }
 0x3cc   : > { %848 = vrot.lane.b32.xlu1 %v2421_v5, %s2096_s28 }
 0x3cd   : > { %796 = vrot.lane.b32.xlu0 %v2419_v4, %s2096_s28  ;;  %s2104_s28 = smov [#allocation13]  }
 0x3d0   : > { %846 = vrot.lane.b32.xlu1 %v2448_v43, %s2097_s12 }
 0x3d1   : > { %794 = vrot.lane.b32.xlu0 %v2438_v35, %s2097_s12  ;;  %s2004_s12 = sshll.u32 %s2104_s28, 4  ;;  %s2005_s12 = int_to_ptr.vmem [resolvable:$false] %s2004_s12 }
 0x440   : > { %v726_v61 = vpop.xlane.xlu0 %725 }
 0x441   : > { %v730_v62 = vsub.f32 %v721_v55, %v726_v61 }
 0x443   : > { %v732_v63 = vmul.f32 1.442695, %v730_v62 }
 0x444   : > { %v729_v0 = vpop.xlane.xlu1 %728  ;;  %v797_v12 = vpop.permute.xlu0 %796 }
 0x445   : > { %v731_v1 = vsub.f32 %v722_v59, %v729_v0  ;;  %1852 = vpow2.f32 %v732_v63  ;;  %v802_v16 = vsel %vm623_vm2, %v797_v12, 0 }
 0x447   : > { %v734_v2 = vmul.f32 1.442695, %v731_v1 }
 0x448   : > { %v849_v3 = vpop.permute.xlu1 %848  ;;  %v795_v18 = vpop.permute.xlu0 %794 }
 0x449   : > { %1854 = vpow2.f32 %v734_v2  ;;  %v854_v6 = vsel %vm623_vm2, %v849_v3, 0 }
 0x44a   : > { %1675 = vmatpush3.bf16.xpose.msra.mxu0 %v854_v6 }
 0x44b   : > { %1686 = vmatprep.subr.bf16.mxu0 %v2093_v54 }
 0x44c   : > { %v847_v7 = vpop.permute.xlu1 %846 }
 0x451   : > { %1677 = vmatmul.mubr.msk.bf16.vlgmr.msra.gmra.mxu0 %vm623_vm2, %v847_v7 }
 0x452   : > { %1688 = vmatprep.mubr.msk.bf16.mxu0 %vm2094_vm1, %v2093_v54  ;;  %v2475_v10 = vpop.eup %1852 }
 0x456   : > { %v2477_v11 = vpop.eup %1854 }
 0x457   : > { %v742_v13 = vpack.c.bf16 %v2477_v11, %v2475_v10 }
 0x459   : > { %1665 = vmatmul.mubr.msk.bf16.vlgmr.msra.gmra.mxu1 %vm723_vm4, %v742_v13 }
 0x45a   : > { %1669 = vmatpush3.bf16.xpose.msra.mxu1 %v802_v16  ;;  %1670 = vmatprep.mubr.msk.bf16.mxu1 %vm2094_vm1, %v2093_v54 }
 0x45b   : > { %1680 = vmatprep.subr.bf16.mxu1 %v2093_v54 }
 0x461   : > { %1671 = vmatmul.mubr.msk.bf16.vlgmr.msra.gmra.mxu1 %vm623_vm2, %v795_v18 }
 0x462   : > { %1682 = vmatprep.mubr.msk.bf16.mxu1 %vm2094_vm1, %v2093_v54 }
 0x511   : > { %v890_v19 = vpop.f32.mrf.mxu0 }
 0x513   : > { %v1678_v9 = vpop.f32.mrf.mxu0 }
 0x515   : > { %v893_v20 = vpop.f32.mrf.mxu0 }
 0x517   : > { %v1679_v21 = vpop.f32.mrf.mxu0 }
 0x519   : > { %v2489_v22 = vpop.f32.mrf.mxu1 }
 0x51b   : > { %v1666_v25 = vpop.f32.mrf.mxu1 }
 0x51d   : > { %v2491_v8 = vpop.f32.mrf.mxu1 }
 0x51f   : > { %v1667_v24 = vpop.f32.mrf.mxu1 }
 0x521   : > { %v838_v26 = vpop.f32.mrf.mxu1 }
 0x522   : > { %v891_v27 = vadd.f32 %v890_v19, %v838_v26 }
 0x523   : > { %v1672_v28 = vpop.f32.mrf.mxu1 }
 0x524   : > { %v897_v29 = vadd.f32 %v891_v27, %v2460_v50 }
 0x525   : > { %v841_v30 = vpop.f32.mrf.mxu1 }
 0x526   : > { %v894_v32 = vadd.f32 %v893_v20, %v841_v30  ;;  %v899_v33 = vsel %vm723_vm4, %v897_v29, -inf }
 0x527   : > { %900 = vmax.xlane.f32.xlu0 %v899_v33  ;;  %v1673_v34 = vpop.f32.mrf.mxu1 }
 0x528   : > { %v898_v36 = vadd.f32 %v894_v32, %v2460_v50 }
 0x52a   : > { %v902_v37 = vsel %vm723_vm4, %v898_v36, -inf }
 0x52b   : > { %903 = vmax.xlane.f32.xlu1 %v902_v37 }
 0x53c   : > { %983 = vrot.lane.b32.xlu1 %v2419_v4, %s2098_s22 }
 0x53d   : > { %919 = vrot.lane.b32.xlu0 %v2450_v44, %s2099_s18 }
 0x540   : > { %981 = vrot.lane.b32.xlu1 %v2438_v35, %s2099_s18 }
 0x541   : > { %1034 = vrot.lane.b32.xlu0 %v2421_v5, %s2098_s22 }
 0x545   : > { %1032 = vrot.lane.b32.xlu0 %v2448_v43, %s2099_s18 }
 0x5b0   : > { %v901_v39 = vpop.xlane.xlu0 %900 }
 0x5b1   : > { %v905_v40 = vsub.f32 %v897_v29, %v901_v39 }
 0x5b3   : > { %v907_v38 = vmul.f32 1.442695, %v905_v40 }
 0x5b4   : > { %v920_v15 = vpop.permute.xlu0 %919  ;;  %v904_v31 = vpop.xlane.xlu1 %903 }
 0x5b5   : > { %v906_v41 = vsub.f32 %v898_v36, %v904_v31  ;;  %1681 = vmatpush3.bf16.msra.mxu1 %v920_v15  ;;  %1856 = vpow2.f32 %v907_v38 }
 0x5b6   : > { %1692 = vmatprep.subr.bf16.mxu1 %v2093_v54 }
 0x5b7   : > { %v909_v42 = vmul.f32 1.442695, %v906_v41 }
 0x5b8   : > { %v984_v17 = vpop.permute.xlu1 %983  ;;  %v1035_v48 = vpop.permute.xlu0 %1034 }
 0x5b9   : > { %1858 = vpow2.f32 %v909_v42  ;;  %v989_v45 = vsel %vm623_vm2, %v984_v17, 0  ;;  %v1040_v51 = vsel %vm623_vm2, %v1035_v48, 0 }
 0x5ba   : > { %1687 = vmatpush3.bf16.xpose.msra.mxu0 %v989_v45 }
 0x5bb   : > { %1698 = vmatprep.subr.bf16.mxu0 %v2093_v54 }
 0x5bc   : > { %v982_v46 = vpop.permute.xlu1 %981  ;;  %v1033_v52 = vpop.permute.xlu0 %1032 }
 0x5c1   : > { %1689 = vmatmul.mubr.msk.bf16.vlgmr.msra.gmra.mxu0 %vm623_vm2, %v982_v46 }
 0x5c2   : > { %1700 = vmatprep.mubr.msk.bf16.mxu0 %vm2094_vm1, %v2093_v54  ;;  %v2510_v23 = vpop.eup %1856 }
 0x5c6   : > { %v2512_v47 = vpop.eup %1858 }
 0x5c7   : > { %v917_v49 = vpack.c.bf16 %v2512_v47, %v2510_v23 }
 0x5c9   : > { %1683 = vmatmul.mubr.msk.bf16.vlgmr.msra.gmra.mxu1 %vm723_vm4, %v917_v49  ;;  %v911_v49 = vsel %vm723_vm4, %v2510_v23, 0.0 }
 0x5ca   : > { %1693 = vmatpush3.bf16.xpose.msra.mxu1 %v1040_v51  ;;  %1694 = vmatprep.mubr.msk.bf16.mxu1 %vm2094_vm1, %v2093_v54  ;;  %v914_v51 = vsel %vm723_vm4, %v2512_v47, 0.0 }
 0x5cb   : > { %1704 = vmatprep.subr.bf16.mxu1 %v2093_v54 }
 0x5d1   : > { %1695 = vmatmul.mubr.msk.bf16.vlgmr.msra.gmra.mxu1 %vm623_vm2, %v1033_v52 }
 0x5d2   : > { %1706 = vmatprep.mubr.msk.bf16.mxu1 %vm2094_vm1, %v2093_v54 }
 0x681   : > { %v1025_v53 = vpop.f32.mrf.mxu0 }
 0x683   : > { %v1690_v55 = vpop.f32.mrf.mxu0 }
 0x685   : > { %v1028_v56 = vpop.f32.mrf.mxu0 }
 0x687   : > { %v1691_v57 = vpop.f32.mrf.mxu0 }
 0x689   : > { %v2524_v58 = vpop.f32.mrf.mxu1 }
 0x68b   : > { %v1684_v14 = vpop.f32.mrf.mxu1 }
 0x68d   : > { %v2526_v59 = vpop.f32.mrf.mxu1 }
 0x68f   : > { %v1685_v60 = vpop.f32.mrf.mxu1 }
 0x691   : > { %v1076_v61 = vpop.f32.mrf.mxu1 }
 0x692   : > { %v1077_v62 = vadd.f32 %v1076_v61, %v1025_v53 }
 0x693   : > { %v1696_v63 = vpop.f32.mrf.mxu1 }
 0x694   : > { %v1083_v0 = vadd.f32 %v1077_v62, %v2460_v50 }
 0x695   : > { %v1079_v1 = vpop.f32.mrf.mxu1 }
 0x696   : > { %v1080_v2 = vadd.f32 %v1079_v1, %v1028_v56  ;;  %v1085_v3 = vsel %vm723_vm4, %v1083_v0, -inf }
 0x697   : > { %1086 = vmax.xlane.f32.xlu1 %v1085_v3  ;;  %v1697_v6 = vpop.f32.mrf.mxu1 }
 0x698   : > { %v1084_v7 = vadd.f32 %v1080_v2, %v2460_v50  ;;  %v739_v6 = vsel %vm723_vm4, %v2477_v11, 0.0 }
 0x69a   : > { %v1088_v12 = vsel %vm723_vm4, %v1084_v7, -inf }
 0x69b   : > { %1089 = vmax.xlane.f32.xlu0 %v1088_v12 }
 0x6a8   : > { %1168 = vrot.lane.b32.xlu1 %v2419_v4, %s2100_s17 }
 0x6ac   : > { %1219 = vrot.lane.b32.xlu1 %v2421_v5, %s2100_s17 }
 0x6b0   : > { %1217 = vrot.lane.b32.xlu1 %v2448_v43, %s2101_s15 }
 0x6b1   : > { %1104 = vrot.lane.b32.xlu0 %v2450_v44, %s2090_s13 }
 0x6b5   : > { %1166 = vrot.lane.b32.xlu0 %v2438_v35, %s2101_s15 }
 0x720   : > { %v1087_v13 = vpop.xlane.xlu1 %1086 }
 0x721   : > { %v1091_v16 = vsub.f32 %v1083_v0, %v1087_v13 }
 0x723   : > { %v1093_v18 = vmul.f32 1.442695, %v1091_v16 }
 0x724   : > { %v1169_v19 = vpop.permute.xlu1 %1168  ;;  %v1090_v9 = vpop.xlane.xlu0 %1089 }
 0x725   : > { %v1174_v20 = vsel %vm623_vm2, %v1169_v19, 0  ;;  %v1092_v21 = vsub.f32 %v1084_v7, %v1090_v9  ;;  %1860 = vpow2.f32 %v1093_v18 }
 0x726   : > { %1705 = vmatpush3.bf16.xpose.msra.mxu1 %v1174_v20  ;;  %v1840_v20 = vld [vmem:[#allocation11 + $0x18] sm:$0xff]  }
 0x727   : > { %v1095_v4 = vmul.f32 1.442695, %v1092_v21  ;;  %1716 = vmatprep.subr.bf16.mxu1 %v2093_v54 }
 0x728   : > { %v1105_v5 = vpop.permute.xlu0 %1104  ;;  %v1220_v24 = vpop.permute.xlu1 %1219 }
 0x729   : > { %1862 = vpow2.f32 %v1095_v4  ;;  %1699 = vmatpush3.bf16.msra.mxu0 %v1105_v5  ;;  %v1225_v27 = vsel %vm623_vm2, %v1220_v24, 0 }
 0x72a   : > { %1710 = vmatprep.subr.bf16.mxu0 %v2093_v54 }
 0x72c   : > { %v1167_v43 = vpop.permute.xlu0 %1166  ;;  %v1218_v28 = vpop.permute.xlu1 %1217 }
 0x72d   : > { %1707 = vmatmul.mubr.msk.bf16.vlgmr.msra.gmra.mxu1 %vm623_vm2, %v1167_v43 }
 0x72e   : > { %1718 = vmatprep.mubr.msk.bf16.mxu1 %vm2094_vm1, %v2093_v54 }
 0x732   : > { %v1861_v35 = vpop.eup %1860 }
 0x733   : > { %v1097_v52 = vsel %vm723_vm4, %v1861_v35, 0.0 }
 0x736   : > { %v1863_v25 = vpop.eup %1862 }
 0x737   : > { %v1103_v26 = vpack.c.bf16 %v1863_v25, %v1861_v35  ;;  %v1100_v53 = vsel %vm723_vm4, %v1863_v25, 0.0 }
 0x739   : > { %1701 = vmatmul.mubr.msk.bf16.vlgmr.msra.gmra.mxu0 %vm723_vm4, %v1103_v26 }
 0x73a   : > { %1711 = vmatpush3.bf16.xpose.msra.mxu0 %v1225_v27  ;;  %1712 = vmatprep.mubr.msk.bf16.mxu0 %vm2094_vm1, %v2093_v54 }
 0x73b   : > { %1722 = vmatprep.subr.bf16.mxu0 %v2093_v54 }
 0x741   : > { %1713 = vmatmul.mubr.msk.bf16.vlgmr.msra.gmra.mxu0 %vm623_vm2, %v1218_v28 }
 0x742   : > { %1730 = vmatprep.mubr.msk.bf16.mxu0 %vm2094_vm1, %v2093_v54  ;;  %1723 = vmatpush3.bf16.msra.mxu0 %v1840_v20 }
 0x743   : > { %1724 = vmatprep.subr.bf16.mxu0 %v2093_v54 }
 0x7ed   : > { %v1210_v29 = vpop.f32.mrf.mxu1 }
 0x7ef   : > { %v1708_v30 = vpop.f32.mrf.mxu1 }
 0x7f0   : > { %v1843_v30 = vld [vmem:[#allocation11] sm:$0xff]  }
 0x7f1   : > { %v1213_v32 = vpop.f32.mrf.mxu1 }
 0x7f3   : > { %v1709_v33 = vpop.f32.mrf.mxu1 }
 0x7f9   : > { %v1144_v34 = vpop.f32.mrf.mxu0 }
 0x7fb   : > { %v1702_v36 = vpop.f32.mrf.mxu0 }
 0x7fd   : > { %v2552_v37 = vpop.f32.mrf.mxu0 }
 0x7ff   : > { %v1703_v39 = vpop.f32.mrf.mxu0 }
 0x801   : > { %v1261_v40 = vpop.f32.mrf.mxu0 }
 0x802   : > { %v1262_v38 = vadd.f32 %v1261_v40, %v1210_v29  ;;  %v1841_v29 = vld [vmem:[#allocation11 + $0x10] sm:$0xff]  }
 0x803   : > { %v1714_v15 = vpop.f32.mrf.mxu0  ;;  %1725 = vmatpush3.bf16.msra.mxu0 %v1841_v29 }
 0x804   : > { %v1268_v31 = vadd.f32 %v1262_v38, %v2460_v50  ;;  %1726 = vmatprep.subr.bf16.mxu0 %v2093_v54 }
 0x805   : > { %v1264_v41 = vpop.f32.mrf.mxu0 }
 0x806   : > { %v1265_v42 = vadd.f32 %v1264_v41, %v1213_v32  ;;  %v1270_v17 = vsel %vm723_vm4, %v1268_v31, -inf }
 0x807   : > { %v1715_v45 = vpop.f32.mrf.mxu0  ;;  %1271 = vmax.xlane.f32.xlu0 %v1270_v17 }
 0x808   : > { %v1269_v46 = vadd.f32 %v1265_v42, %v2460_v50  ;;  %v1607_v42 = vld [vmem:[%s2649_s7] ss:$0 sm:$0xff] }
 0x80a   : > { %v1273_v48 = vsel %vm723_vm4, %v1269_v46, -inf }
 0x80b   : > { %1274 = vmax.xlane.f32.xlu1 %v1273_v48 }
 0x80f   : > { %912 = vadd.xlane.f32.xlu1 %v911_v49 }
 0x813   : > { %915 = vadd.xlane.f32.xlu1 %v914_v51 }
 0x817   : > { %1098 = vadd.xlane.f32.xlu1 %v1097_v52 }
 0x81b   : > { %1101 = vadd.xlane.f32.xlu1 %v1100_v53 }
 0x81d   : > { %1289 = vrot.lane.b32.xlu0 %v2450_v44, %s2102_s23  ;;  %v736_v44 = vsel %vm723_vm4, %v2475_v10, 0.0 }
 0x890   : > { %v1272_v50 = vpop.xlane.xlu0 %1271 }
 0x891   : > { %v1276_v55 = vsub.f32 %v1268_v31, %v1272_v50 }
 0x893   : > { %v1278_v56 = vmul.f32 1.442695, %v1276_v55 }
 0x894   : > { %v1290_v57 = vpop.permute.xlu0 %1289  ;;  %v1275_v14 = vpop.xlane.xlu1 %1274 }
 0x895   : > { %1864 = vpow2.f32 %v1278_v56  ;;  %v1277_v23 = vsub.f32 %v1269_v46, %v1275_v14  ;;  %1717 = vmatpush3.bf16.msra.mxu1 %v1290_v57 }
 0x897   : > { %v1280_v60 = vmul.f32 1.442695, %v1277_v23 }
 0x898   : > { %v913_v47 = vpop.xlane.xlu1 %912 }
 0x899   : > { %1866 = vpow2.f32 %v1280_v60 }
 0x89a   : > { %1868 = vrcp.f32 %v913_v47 }
 0x89c   : > { %v916_v62 = vpop.xlane.xlu1 %915 }
 0x8a0   : > { %v1099_v3 = vpop.xlane.xlu1 %1098 }
 0x8a1   : > { %1870 = vrcp.f32 %v1099_v3 }
 0x8a2   : > { %v1865_v61 = vpop.eup %1864  ;;  %1872 = vrcp.f32 %v916_v62 }
 0x8a3   : > { %v1282_v63 = vsel %vm723_vm4, %v1865_v61, 0.0 }
 0x8a4   : > { %1283 = vadd.xlane.f32.xlu1 %v1282_v63  ;;  %v1102_v7 = vpop.xlane.xlu1 %1101 }
 0x8a5   : > { %1874 = vrcp.f32 %v1102_v7 }
 0x8a6   : > { %v1867_v0 = vpop.eup %1866 }
 0x8a7   : > { %v1285_v1 = vsel %vm723_vm4, %v1867_v0, 0.0  ;;  %v1288_v2 = vpack.c.bf16 %v1867_v0, %v1865_v61  ;;  %v1869_v12 = vpop.eup %1868 }
 0x8a8   : > { %737 = vadd.xlane.f32.xlu1 %v736_v44  ;;  %1286 = vadd.xlane.f32.xlu0 %v1285_v1  ;;  %v968_v10 = vmul.f32 %v1869_v12, %v2524_v58 }
 0x8a9   : > { %1719 = vmatmul.mubr.msk.bf16.vlgmr.msra.gmra.mxu1 %vm723_vm4, %v1288_v2 }
 0x8ac   : > { %740 = vadd.xlane.f32.xlu1 %v739_v6 }
 0x8ae   : > { %v1871_v13 = vpop.eup %1870 }
 0x8af   : > { %v1873_v16 = vpop.eup %1872  ;;  %v1153_v18 = vmul.f32 %v1871_v13, %v1144_v34 }
 0x8b0   : > { %v969_v19 = vmul.f32 %v1873_v16, %v2526_v59 }
 0x8b2   : > { %v1875_v9 = vpop.eup %1874 }
 0x8b3   : > { %v1154_v11 = vmul.f32 %v1875_v9, %v2552_v37 }
 0x8bd   : > { %972 = vrot.lane.b32.xlu1 %v968_v10, %s2103_s27 }
 0x8be   : > { %1157 = vrot.lane.b32.xlu0 %v1153_v18, %s2092_s29 }
 0x8c1   : > { %974 = vrot.lane.b32.xlu1 %v969_v19, %s2103_s27 }
 0x8c5   : > { %1159 = vrot.lane.b32.xlu1 %v1154_v11, %s2092_s29  ;;  %s370_s29 = scalar_lea.vmem [#allocation13], %s2333_s20  ;;  %s1440_s20 = scalar_lea.sflag [#allocation7], %s2330_s1 }
 0x8c6   : > { %s1453_s19 = sshll.u32 %s370_s29, 4  ;;  %s2593_s19 = int_to_ptr.vmem [resolvable:$true] %s1453_s19 }
 0x8c7   : > { %s2000_s0 = scalar_lea.vmem %s2593_s19, 256  ;;  %p2007_p9 = scmp.lt.s32.totalorder %s2593_s19, %s2005_s12 }
 0x8c8   : > { %p2001_p0 = scmp.ne.s32.totalorder %s2593_s19, %s2000_s0 }
 0x8ca   : > { %p2002_p3 = pnand %p2001_p0, %p2678_p5 }
 0x8cc   : > { %p2003_p11 = pneg %p2002_p3 }
 0x92d   : > { %v1284_v21 = vpop.xlane.xlu1 %1283 }
 0x931   : > { %v738_v58 = vpop.xlane.xlu1 %737  ;;  %v1287_v43 = vpop.xlane.xlu0 %1286 }
 0x932   : > { %1876 = vrcp.f32 %v738_v58 }
 0x935   : > { %v741_v4 = vpop.xlane.xlu1 %740  ;;  %v1158_v26 = vpop.permute.xlu0 %1157 }
 0x936   : > { %1878 = vrcp.f32 %v741_v4 }
 0x937   : > { %1880 = vrcp.f32 %v1284_v21 }
 0x938   : > { %1882 = vrcp.f32 %v1287_v43 }
 0x939   : > { %v973_v5 = vpop.permute.xlu1 %972 }
 0x93d   : > { %v975_v25 = vpop.permute.xlu1 %974 }
 0x93f   : > { %v1877_v35 = vpop.eup %1876 }
 0x940   : > { %v789_v59 = vmul.f32 %v1877_v35, %v2489_v22  ;;  %v1842_v22 = vld [vmem:[#allocation11 + $0x8] sm:$0xff]  }
 0x941   : > { %v1160_v28 = vpop.permute.xlu1 %1159  ;;  %1727 = vmatpush3.bf16.msra.mxu0 %v1842_v22 }
 0x942   : > { %791 = vst.msk [vmem:[#allocation2] sm:$0xff] %vm723_vm4, %v789_v59  ;;  %1728 = vmatprep.subr.bf16.mxu0 %v2093_v54 }
 0x943   : > { %v1879_v24 = vpop.eup %1878  ;;  %979 = vst.msk [vmem:[#allocation2] sm:$0xff] %vm978_vm5, %v973_v5 }
 0x944   : > { %v790_v27 = vmul.f32 %v1879_v24, %v2491_v8  ;;  %1164 = vst.msk [vmem:[#allocation2] sm:$0xff] %vm1163_vm6, %v1158_v26  ;;  %v1881_v32 = vpop.eup %1880 }
 0x945   : > { %1729 = vmatpush3.bf16.msra.mxu0 %v1843_v30  ;;  %v1883_v36 = vpop.eup %1882 }
 0x946   : > { %792 = vst.msk [vmem:[#allocation2 + $0x8] sm:$0xff] %vm723_vm4, %v790_v27 }
 0x947   : > { %980 = vst.msk [vmem:[#allocation2 + $0x8] sm:$0xff] %vm978_vm5, %v975_v25 }
 0x948   : > { %1165 = vst.msk [vmem:[#allocation2 + $0x8] sm:$0xff] %vm1163_vm6, %v1160_v28 }
 0x969   : > { %v1329_v33 = vpop.f32.mrf.mxu1 }
 0x96a   : > { %v1338_v8 = vmul.f32 %v1881_v32, %v1329_v33 }
 0x96b   : > { %v1720_v34 = vpop.f32.mrf.mxu1 }
 0x96c   : > { %1342 = vrot.lane.b32.xlu1 %v1338_v8, %s2098_s22 }
 0x96d   : > { %v1332_v37 = vpop.f32.mrf.mxu1 }
 0x96e   : > { %v1339_v39 = vmul.f32 %v1883_v36, %v1332_v37 }
 0x96f   : > { %v1721_v40 = vpop.f32.mrf.mxu1 }
 0x970   : > { %1344 = vrot.lane.b32.xlu1 %v1339_v39, %s2098_s22  ;;  %s2006_s22 = scalar_lea.vmem %s2005_s12, 512 }
 0x971   : > { %p2008_p13 = scmp.lt.s32.totalorder %s2006_s22, %s2000_s0 }
 0x973   : > { %p2009_p1 = por %p2008_p13, %p2007_p9 }
 0x975   : > { %p2010_p4 = pnand %p2009_p1, %p2003_p11 }
 0x9de   : > { %v1343_v38 = vpop.permute.xlu1 %1342 }
 0x9df   : > { %1349 = vst.msk [vmem:[#allocation2] sm:$0xff] %vm1348_vm7, %v1343_v38 }
 0x9e2   : > { %v1345_v15 = vpop.permute.xlu1 %1344 }
 0x9e3   : > { %1350 = vst.msk [vmem:[#allocation2 + $0x8] sm:$0xff] %vm1348_vm7, %v1345_v15 }
 0x9e6   : > { %v1351_v54 = vld [vmem:[#allocation2] sm:$0xff] }
 0x9ea   : > { %v1352_v31 = vld [vmem:[#allocation2 + $0x8] sm:$0xff] }
 0x9eb   : > { %v1353_v41 = vpack.c.bf16 %v1352_v31, %v1351_v54 }
 0x9ed   : > { %1731 = vmatmul.mubr.msk.bf16.vlgmr.msra.gmra.mxu0 %vm438_vm0, %v1353_v41 }
 0xaad   : > { %v1430_v17 = vpop.f32.mrf.mxu0 }
 0xaae   : > { %v1431_v45 = vadd.f32 %v1607_v42, %v1430_v17 }
 0xaaf   : > { %v1732_v46 = vpop.f32.mrf.mxu0 }
 0xab0   : > { %1437 = vst.msk [vmem:[%s370_s29] sm:$0xff] %vm438_vm0, %v1431_v45 }
 0xab1   : > { %v1433_v48 = vpop.f32.mrf.mxu0 }
 0xab2   : > { %v1434_v49 = vadd.f32 %v1607_v42, %v1433_v48 }
 0xab3   : > { %v1733_v51 = vpop.f32.mrf.mxu0 }
 0xab4   : > { %1438 = vst.msk [vmem:[%s370_s29 + $0x8] sm:$0xff] %vm438_vm0, %v1434_v49 }
 0xab5   : > { %2013 = shalt.err (!%p2010_p4)
}
 0xab6   : > { %s2014_s18 = scalar_lea.hbm %s2598_s4, 256  ;;  %s2018_s23 = scalar_lea.hbm %s2650_s8, 512 }
 0xab7   : > { %p2015_p10 = scmp.ne.s32.totalorder %s2598_s4, %s2014_s18  ;;  %p2019_p2 = scmp.lt.s32.totalorder %s2598_s4, %s2650_s8 }
 0xab8   : > { %p2020_p6 = scmp.lt.s32.totalorder %s2018_s23, %s2014_s18 }
 0xab9   : > { %p2016_p7 = pnand %p2015_p10, %p2678_p5 }
 0xaba   : > { %p2021_p12 = por %p2020_p6, %p2019_p2 }
 0xabb   : > { %p2017_p8 = pneg %p2016_p7 }
 0xabd   : > { %p2022_p0 = pnand %p2021_p12, %p2017_p8 }
 0xabf   : > { %2025 = shalt.err (!%p2022_p0)
}
 0xac0   : > { %s2105_s6 = smov 128   ;;  %s2106_s29 = smov 8  }
 0xac1   : > { %1746 = dma.vmem_to_hbm [thread:$0]  (%p2678_p5), %s2593_s19, 256, %s2598_s4, %s1440_s20, %s2105_s6, %s2105_s6, %s2106_s29  }
 0xac2 PF: > { %s1468_s21 = sand.u32 1, %s2066_s30   ;;  %p2679_p3 = scmp.ne.s32.totalorder %s2662_s14, 0 }
 0xac3   : > { %p2680_p11 = scmp.ge.s32.totalorder %s2078_s11, 2  ;;  %s1469_s25 = scalar_lea.sflag [#allocation7], %s1468_s21 }
 0xac5   : > { %p1763_p9 = pnand %p2680_p11, %p2679_p3 }
 0xac7   : > { %p1764_p13 = pneg %p1763_p9 }
 0xac9   : > { %2061 = dma.done.wait (%p1764_p13), %s1469_s25, 256  }
 0xaca   : > { %2063 = vsyncadd (%p1764_p13), %s1469_s25, 4294967040  ;;  %s2681_s26 = sld [smem:[#allocation20_spill]]  ;;  %p29_p1 = scmp.ge.s32.totalorder %s2230_s16, 4  }
 0xacb   : > { %s2682_s30 = smov %s2070_s9  ;;  %s2683_s9 = smov %s2074_s10 }
 0xacc   : > { %s2685_s11 = smov %s2230_s16  ;;  %31 = sbr.rel (!%p29_p1) target bundleno = 16 (0x10), region = 114 }
 0xad0   : > { %s2684_s10 = smov %s2681_s26 }
 0xad1   :  { %1474 = vsyncpa [#allocation6], 1 }
 0xad2   :  { %1476 = vsyncpa [#allocation6 + $0x1], 1 }
 0xad3   :  { %1477 = vsyncpa [#allocation9], 1 }
 0xad4   :  { %1479 = vsyncpa [#allocation9 + $0x1], 1 }
 0xad5   :  { %1480 = vsyncpa [#allocation12], 1 }
 0xad6   :  { %1481 = vsyncpa [#allocation7], 1 }
 0xad7   :  { %1483 = vsyncpa [#allocation7 + $0x1], 1 }

</bundles_post_ra>
